<compile_context>
chip_gen: v6e
topology: v6e:2x2x1
jax: 0.10.0
libtpu: 0.0.40
codegen_flags: <defaults>
</compile_context>

<pallas_src>
import jax
import jax.numpy as jnp
from jax import lax
from jax.experimental import pallas as pl
from jax.experimental.pallas import tpu as pltpu

MASK = -1e30          # "no edge" sentinel folded into the edge-logit matrix
LN_EPS = 1e-5
TM = 128              # dst-row tile: full MXU rows on v5e, 128-lane aligned


def _vmem_cap_bytes():
    try:
        return int(pltpu.get_tpu_info().vmem_capacity_bytes)
    except Exception:
        return 64 << 20   # conservative fallback: v7x per-TensorCore VMEM


_VMEM_HI = max(8 << 20, int(0.75 * _vmem_cap_bytes()))


def _clamp_vmem(nbytes, lo=8 << 20):
    return int(min(max(int(1.5 * nbytes), lo), _VMEM_HI))


# --------------------------------------------------------------- projection
def _proj_kernel(h_ref, w_ref, o_ref):
    # bf16 MXU operands, f32 accumulation, bf16 store (halves hp HBM/VMEM traffic).
    o_ref[...] = jnp.dot(h_ref[...].astype(jnp.bfloat16), w_ref[...],
                         preferred_element_type=jnp.float32).astype(jnp.bfloat16)


def _project(h, w_bf16, *, tm=TM):
    n, d = h.shape
    vmem = 2 * tm * d * 4 + 2 * d * d * 2 + 2 * tm * d * 2 + 2 * tm * d * 4
    return pl.pallas_call(
        _proj_kernel,
        out_shape=jax.ShapeDtypeStruct((n, d), jnp.bfloat16),
        grid=(n // tm,),
        in_specs=[pl.BlockSpec((tm, d), lambda i: (i, 0)),
                  pl.BlockSpec((d, d), lambda i: (0, 0))],
        out_specs=pl.BlockSpec((tm, d), lambda i: (i, 0)),
        compiler_params=pltpu.CompilerParams(
            dimension_semantics=("parallel",),
            vmem_limit_bytes=_clamp_vmem(vmem),
        ),
    )(h, w_bf16)


# --------------------------------------------- GATConv + SiLU + residual
def _gat_attn_kernel(hp_ref, h_ref, e_ref, asrc_ref, adst_ref, b_ref, o_ref):
    tm = o_ref.shape[0]
    row0 = pl.multiple_of(pl.program_id(0) * tm, tm)

    hp_all = hp_ref[...]                         # [N, D] bf16, resident across the grid
    hp_tile = hp_ref[pl.ds(row0, tm), :]         # [TM, D] bf16 projected dst rows

    # attention logits; the bf16 edge matrix carries both the edge-attr term and the
    # adjacency mask (non-edges / pad columns hold -1e30 -> vanish after softmax).
    # a_src . hp[src] is hoisted out of the grid loop and comes in as asrc_ref.
    a_dst_col = jnp.sum(hp_tile.astype(jnp.float32) * adst_ref[...],
                        axis=-1, keepdims=True)                            # [TM, 1] (VPU)
    logits = a_dst_col + asrc_ref[...] + e_ref[...].astype(jnp.float32)    # [TM, N]
    logits = jnp.maximum(logits, 0.2 * logits)                             # LeakyReLU(0.2)

    # masked softmax over source nodes; normalization deferred past the matmul
    m = jnp.max(logits, axis=-1, keepdims=True)
    p = jnp.exp(logits - m)                                                # [TM, N]
    denom = jnp.sum(p, axis=-1, keepdims=True)                             # [TM, 1]

    # unnormalized aggregation (bf16 MXU operands, f32 accumulation); normalize on the
    # small [TM, D] result, then bias + SiLU + residual
    agg = jnp.dot(p.astype(jnp.bfloat16), hp_all,
                  preferred_element_type=jnp.float32)                      # [TM, D]
    hn = agg * pl.reciprocal(denom, approx=True) + b_ref[...]
    o_ref[...] = hn * pl.reciprocal(1.0 + jnp.exp(-hn), approx=True) + h_ref[...]


def _gat_layer(h, e, w_bf16, a_src, a_dst, bias, *, tm=TM):
    n, d = h.shape
    hp = _project(h, w_bf16, tm=tm)                                         # [N, D] bf16
    # hoisted: a_src . hp[j] for every source node j (identical for every dst tile)
    asrc_row = jnp.sum(hp.astype(jnp.float32) * a_src, axis=-1)[None, :]    # [1, N] f32

    vmem = (2 * n * d * 2          # resident bf16 hp (double buffered)
            + 2 * tm * n * 2       # bf16 edge-logit row block (double buffered)
            + 4 * tm * d * 4       # h residual tile + out tile (double buffered)
            + 2 * tm * n * 4       # logits / p f32 temporaries
            + tm * n * 2           # bf16 copy of p for the MXU
            + 4 * tm * d * 4       # agg / hn / SiLU temporaries
            + 4 * n * 4            # asrc_row
            + 8 * d * 4)           # a_dst / bias
    return pl.pallas_call(
        _gat_attn_kernel,
        out_shape=jax.ShapeDtypeStruct((n, d), jnp.float32),
        grid=(n // tm,),
        in_specs=[
            pl.BlockSpec((n, d), lambda i: (0, 0)),     # hp: fetched once, stays resident
            pl.BlockSpec((tm, d), lambda i: (i, 0)),    # h row tile (residual)
            pl.BlockSpec((tm, n), lambda i: (i, 0)),    # bf16 edge-logit / mask row block
            pl.BlockSpec((1, n), lambda i: (0, 0)),     # hoisted a_src . hp row
            pl.BlockSpec((1, d), lambda i: (0, 0)),     # a_dst
            pl.BlockSpec((1, d), lambda i: (0, 0)),     # bias
        ],
        out_specs=pl.BlockSpec((tm, d), lambda i: (i, 0)),
        compiler_params=pltpu.CompilerParams(
            dimension_semantics=("parallel",),          # independent dst-row blocks
            vmem_limit_bytes=_clamp_vmem(vmem),
        ),
    )(hp, h, e, asrc_row, a_dst, bias)


# ----------------------------------- graph LayerNorm + global mean pooling
def _norm_pool_kernel(h_ref, oht_ref, invc_ref, invcd_ref, gamma_ref, beta_ref,
                      out_ref, acc_sc):
    i = pl.program_id(0)

    @pl.when(i == 0)
    def _init():
        acc_sc[...] = jnp.zeros_like(acc_sc)

    h = h_ref[...]                                   # [TM, D]
    oh_t = oht_ref[0]                                # [G, TM] (pre-transposed in glue)
    # single fused accumulation matmul: per-graph sum and sum-of-squares together
    acc_sc[...] += jnp.dot(oh_t, jnp.concatenate([h, h * h], axis=-1),
                           preferred_element_type=jnp.float32)             # [G, 2D]

    @pl.when(i == pl.num_programs(0) - 1)
    def _finalize():
        d = out_ref.shape[1]
        acc = acc_sc[...]
        sum_gd, sq_gd = acc[:, :d], acc[:, d:]
        inv_cd = invcd_ref[...]                                    # 1 / (count * D_real)
        mu = jnp.sum(sum_gd, axis=-1, keepdims=True) * inv_cd      # graph-LN mean
        var = jnp.sum(sq_gd, axis=-1, keepdims=True) * inv_cd - mu * mu
        inv_std = lax.rsqrt(var + LN_EPS)
        mean_rows = sum_gd * invc_ref[...]                         # per-graph mean feature
        out_ref[...] = gamma_ref[...] * ((mean_rows - mu) * inv_std) + beta_ref[...]


def _norm_pool(h, onehot_t_tiles, inv_c, inv_cd, gamma, beta, *, tm=TM):
    n, d = h.shape
    g = onehot_t_tiles.shape[1]
    vmem = (2 * tm * d * 4 + 2 * g * tm * 4 + 2 * tm * d * 4
            + 2 * g * 2 * d * 4 + 2 * g * d * 4 + 8 * d * 4 + 8 * g * 4)
    return pl.pallas_call(
        _norm_pool_kernel,
        out_shape=jax.ShapeDtypeStruct((g, d), jnp.float32),
        grid=(n // tm,),
        in_specs=[
            pl.BlockSpec((tm, d), lambda i: (i, 0)),
            pl.BlockSpec((1, g, tm), lambda i: (i, 0, 0)),
            pl.BlockSpec((g, 1), lambda i: (0, 0)),
            pl.BlockSpec((g, 1), lambda i: (0, 0)),
            pl.BlockSpec((1, d), lambda i: (0, 0)),
            pl.BlockSpec((1, d), lambda i: (0, 0)),
        ],
        out_specs=pl.BlockSpec((g, d), lambda i: (0, 0)),
        scratch_shapes=[pltpu.VMEM((g, 2 * d), jnp.float32)],
        compiler_params=pltpu.CompilerParams(
            dimension_semantics=("arbitrary",),         # cross-tile reduction into scratch
            vmem_limit_bytes=_clamp_vmem(vmem),
        ),
    )(h, onehot_t_tiles, inv_c, inv_cd, gamma, beta)


# ----------------------------------------------------------------- forward
def gat_forward(x, e1, e2, params, onehot_t_tiles, inv_c, inv_cd, *, tm=TM):
    # GATConv1 -> SiLU -> dropout(eval: identity) -> residual
    h = _gat_layer(x, e1, params["w1"], params["as1"], params["ad1"], params["b1"], tm=tm)
    # GATConv2 -> SiLU -> dropout(eval: identity) -> residual
    h = _gat_layer(h, e2, params["w2"], params["as2"], params["ad2"], params["b2"], tm=tm)
    # TODO(synk): training-mode Dropout(p=0.5) omitted (inference semantics);
    # cfg.GAT_NODE_AGGREGATION assumed to be global mean pooling.
    return _norm_pool(h, onehot_t_tiles, inv_c, inv_cd,
                      params["gamma"], params["beta"], tm=tm)


# --------------------------------------------------- pure-JAX reference
def _gat_layer_ref(h, e, w_bf16, a_src, a_dst, bias):
    hp = jnp.dot(h.astype(jnp.bfloat16), w_bf16,
                 preferred_element_type=jnp.float32).astype(jnp.bfloat16)
    hpf = hp.astype(jnp.float32)
    logits = (jnp.sum(hpf * a_dst, axis=-1, keepdims=True)
              + jnp.sum(hpf * a_src, axis=-1)[None, :]
              + e.astype(jnp.float32))
    logits = jnp.maximum(logits, 0.2 * logits)
    p = jnp.exp(logits - jnp.max(logits, axis=-1, keepdims=True))
    denom = jnp.sum(p, axis=-1, keepdims=True)
    agg = jnp.dot(p.astype(jnp.bfloat16), hp, preferred_element_type=jnp.float32)
    hn = agg / denom + bias
    return hn * jax.nn.sigmoid(hn) + h


def gat_reference(x, e1, e2, params, onehot, inv_c, inv_cd):
    h = _gat_layer_ref(x, e1, params["w1"], params["as1"], params["ad1"], params["b1"])
    h = _gat_layer_ref(h, e2, params["w2"], params["as2"], params["ad2"], params["b2"])
    sum_gd = onehot.T @ h
    sq_gd = onehot.T @ (h * h)
    mu = jnp.sum(sum_gd, axis=-1, keepdims=True) * inv_cd
    var = jnp.sum(sq_gd, axis=-1, keepdims=True) * inv_cd - mu * mu
    inv_std = lax.rsqrt(var + LN_EPS)
    return params["gamma"] * ((sum_gd * inv_c - mu) * inv_std) + params["beta"]


def _glorot(key, shape):
    fan_in, fan_out = shape[0], shape[-1]
    lim = (6.0 / (fan_in + fan_out)) ** 0.5
    return jax.random.uniform(key, shape, jnp.float32, -lim, lim)


if __name__ == "__main__":
    D, EDGE_DIM = 16, 4               # IN_GAT_DIM=16, EDGE_DIM=4
    DP = 128                          # lane-padded feature dim
    sizes = [40, 56, 48, 36]          # four graphs in the batch
    G = len(sizes)
    N = sum(sizes)                    # 180 real nodes
    NP = ((N + TM - 1) // TM) * TM    # 256 padded nodes (multiple of row tile & lanes)

    key = jax.random.PRNGKey(0)
    ks = jax.random.split(key, 12)

    # graph structure: bidirectional ring inside each graph
    src_l, dst_l, batch_l = [], [], []
    off = 0
    for gi, sz in enumerate(sizes):
        for v in range(sz):
            u = (v + 1) % sz
            src_l += [off + v, off + u]
            dst_l += [off + u, off + v]
        batch_l += [gi] * sz
        off += sz
    src = jnp.array(src_l, jnp.int32)
    dst = jnp.array(dst_l, jnp.int32)
    batch = jnp.array(batch_l, jnp.int32)
    E = int(src.shape[0])

    x_real = jax.random.normal(ks[0], (N, D), jnp.float32)
    edge_attr = jax.random.normal(ks[1], (E, EDGE_DIM), jnp.float32)

    # parameters (PyG-style glorot, zero bias), zero-padded to DP lanes.  Pad feature
    # lanes stay exactly zero through both layers (zero W rows/cols, zero bias/gamma
    # pads), which is what lets inv_cd below use the real D rather than DP.
    def pad2(a, r, c):
        return jnp.zeros((r, c), jnp.float32).at[:a.shape[0], :a.shape[1]].set(a)

    params = dict(
        w1=pad2(_glorot(ks[2], (D, D)), DP, DP).astype(jnp.bfloat16),
        as1=pad2(_glorot(ks[3], (1, D)), 1, DP),
        ad1=pad2(_glorot(ks[4], (1, D)), 1, DP),
        b1=jnp.zeros((1, DP), jnp.float32),
        w2=pad2(_glorot(ks[5], (D, D)), DP, DP).astype(jnp.bfloat16),
        as2=pad2(_glorot(ks[6], (1, D)), 1, DP),
        ad2=pad2(_glorot(ks[7], (1, D)), 1, DP),
        b2=jnp.zeros((1, DP), jnp.float32),
        gamma=pad2(jnp.ones((1, D), jnp.float32), 1, DP),   # zero gamma on pad lanes
        beta=jnp.zeros((1, DP), jnp.float32),
    )
    we1, ae1 = _glorot(ks[8], (EDGE_DIM, D)), _glorot(ks[9], (1, D))
    we2, ae2 = _glorot(ks[10], (EDGE_DIM, D)), _glorot(ks[11], (1, D))

    # node features, padded to [NP, DP]
    x = jnp.zeros((NP, DP), jnp.float32).at[:N, :D].set(x_real)

    # dense edge-attention logit matrices (bf16): real edges carry the edge-attr
    # attention term, the diagonal carries the self-loop term (fill_value='mean'),
    # everything else (incl. lane-pad columns) is a -1e30 sentinel = adjacency mask.
    deg = jax.ops.segment_sum(jnp.ones((E,), jnp.float32), dst, num_segments=NP)
    loop_attr = (jax.ops.segment_sum(edge_attr, dst, num_segments=NP)
                 / jnp.maximum(deg, 1.0)[:, None])
    idx = jnp.arange(NP)

    def edge_att_dense(we, ae):
        e_alpha = jnp.sum((edge_attr @ we) * ae, axis=-1)        # [E]
        loop_alpha = jnp.sum((loop_attr @ we) * ae, axis=-1)     # [NP]
        dense = jnp.full((NP, NP), MASK, jnp.float32)
        dense = dense.at[dst, src].set(e_alpha)
        dense = dense.at[idx, idx].set(loop_alpha)               # self loops (pad rows too)
        return dense.astype(jnp.bfloat16)

    e1 = edge_att_dense(we1, ae1)
    e2 = edge_att_dense(we2, ae2)

    # pooling / LayerNorm glue: one-hot graph membership, reciprocal count constants
    onehot = jnp.zeros((NP, G), jnp.float32).at[jnp.arange(N), batch].set(1.0)
    counts = jnp.sum(onehot, axis=0)[:, None]                    # [G, 1]
    inv_c = 1.0 / counts
    inv_cd = 1.0 / (counts * D)                                  # real D, not padded DP
    onehot_t_tiles = onehot.T.reshape(G, NP // TM, TM).transpose(1, 0, 2)  # [nt, G, TM]

    out = jax.jit(gat_forward)(x, e1, e2, params, onehot_t_tiles, inv_c, inv_cd)
    out = jax.block_until_ready(out)

    ref = gat_reference(x, e1, e2, params, onehot, inv_c, inv_cd)
    assert out.shape == (G, DP)
    assert bool(jnp.all(jnp.isfinite(out[:, :D])))
    # tolerance covers bf16 MXU operands and the approximate EUP reciprocals
    assert bool(jnp.allclose(out, ref, atol=2e-2, rtol=2e-2)), "mismatch vs JAX reference"
    print("KERNEL_OK")
</pallas_src>

<mosaic_0001>
module attributes {stable_mosaic.version = 11 : i64} {
  func.func @_proj_kernel(%arg0: i32, %arg1: memref<128x128xf32, #tpu.memory_space<vmem>>, %arg2: memref<128x128xbf16, #tpu.memory_space<vmem>>, %arg3: memref<128x128xbf16, #tpu.memory_space<vmem>>) attributes {dimension_semantics = [#tpu.dimension_semantics<parallel>], iteration_bounds = array<i64: 2>, scalar_prefetch = 0 : i64, scratch_operands = 0 : i64, tpu.core_type = #tpu.core_type<tc>, window_params = [{transform_indices = @transform_0, window_bounds = array<i64: 128, 128>}, {pipeline_mode = #tpu.pipeline_mode<synchronous>, transform_indices = @transform_1, window_bounds = array<i64: 128, 128>}, {transform_indices = @transform_2, window_bounds = array<i64: 128, 128>}]} {
    %c0 = arith.constant 0 : index
    %c0_0 = arith.constant 0 : index
    %0 = vector.load %arg1[%c0, %c0_0] : memref<128x128xf32, #tpu.memory_space<vmem>>, vector<128x128xf32>
    %1 = arith.truncf %0 : vector<128x128xf32> to vector<128x128xbf16>
    %c0_1 = arith.constant 0 : index
    %c0_2 = arith.constant 0 : index
    %2 = vector.load %arg2[%c0_1, %c0_2] : memref<128x128xbf16, #tpu.memory_space<vmem>>, vector<128x128xbf16>
    %cst = arith.constant dense<0.000000e+00> : vector<128x128xf32>
    %3 = tpu.matmul %1, %2, %cst {dimension_numbers = #tpu.dot_dimension_numbers<[1], [0], [0], [1], [0, 0, 1, 1], [], []>} : vector<128x128xbf16>, vector<128x128xbf16>, vector<128x128xf32> -> vector<128x128xf32>
    %4 = arith.truncf %3 : vector<128x128xf32> to vector<128x128xbf16>
    %c0_3 = arith.constant 0 : index
    %c0_4 = arith.constant 0 : index
    %5 = vector.load %arg3[%c0_3, %c0_4] : memref<128x128xbf16, #tpu.memory_space<vmem>>, vector<128x128xbf16>
    tpu.vector_store %arg3[%c0_3, %c0_4], %4 {strides = array<i32>} : memref<128x128xbf16, #tpu.memory_space<vmem>>, vector<128x128xbf16>,
    return
  }
  func.func @transform_0(%arg0: i32) -> (i32, i32) {
    %c0_i32 = arith.constant 0 : i32
    %c0_i32_0 = arith.constant 0 : i32
    return %arg0, %c0_i32 : i32, i32
  }
  func.func @transform_1(%arg0: i32) -> (i32, i32) {
    %c0_i32 = arith.constant 0 : i32
    %c0_i32_0 = arith.constant 0 : i32
    %c0_i32_1 = arith.constant 0 : i32
    return %c0_i32, %c0_i32_0 : i32, i32
  }
  func.func @transform_2(%arg0: i32) -> (i32, i32) {
    %c0_i32 = arith.constant 0 : i32
    %c0_i32_0 = arith.constant 0 : i32
    return %arg0, %c0_i32 : i32, i32
  }
}

module attributes {stable_mosaic.version = 11 : i64} {
  func.func @_gat_attn_kernel(%arg0: i32, %arg1: memref<256x128xbf16, #tpu.memory_space<vmem>>, %arg2: memref<128x128xf32, #tpu.memory_space<vmem>>, %arg3: memref<128x256xbf16, #tpu.memory_space<vmem>>, %arg4: memref<1x256xf32, #tpu.memory_space<vmem>>, %arg5: memref<1x128xf32, #tpu.memory_space<vmem>>, %arg6: memref<1x128xf32, #tpu.memory_space<vmem>>, %arg7: memref<128x128xf32, #tpu.memory_space<vmem>>) attributes {dimension_semantics = [#tpu.dimension_semantics<parallel>], iteration_bounds = array<i64: 2>, scalar_prefetch = 0 : i64, scratch_operands = 0 : i64, tpu.core_type = #tpu.core_type<tc>, window_params = [{pipeline_mode = #tpu.pipeline_mode<synchronous>, transform_indices = @transform_0, window_bounds = array<i64: 256, 128>}, {transform_indices = @transform_1, window_bounds = array<i64: 128, 128>}, {transform_indices = @transform_2, window_bounds = array<i64: 128, 256>}, {pipeline_mode = #tpu.pipeline_mode<synchronous>, transform_indices = @transform_3, window_bounds = array<i64: 1, 256>}, {pipeline_mode = #tpu.pipeline_mode<synchronous>, transform_indices = @transform_4, window_bounds = array<i64: 1, 128>}, {pipeline_mode = #tpu.pipeline_mode<synchronous>, transform_indices = @transform_5, window_bounds = array<i64: 1, 128>}, {transform_indices = @transform_6, window_bounds = array<i64: 128, 128>}]} {
    %c128_i32 = arith.constant 128 : i32
    %0 = arith.muli %arg0, %c128_i32 : i32
    %1 = tpu.assume_multiple %0, 128 : i32
    %c0 = arith.constant 0 : index
    %c0_0 = arith.constant 0 : index
    %2 = vector.load %arg1[%c0, %c0_0] : memref<256x128xbf16, #tpu.memory_space<vmem>>, vector<256x128xbf16>
    %3 = arith.index_cast %1 : i32 to index
    %c0_1 = arith.constant 0 : index
    %4 = vector.load %arg1[%3, %c0_1] : memref<256x128xbf16, #tpu.memory_space<vmem>>, vector<128x128xbf16>
    %5 = arith.extf %4 : vector<128x128xbf16> to vector<128x128xf32>
    %c0_2 = arith.constant 0 : index
    %c0_3 = arith.constant 0 : index
    %6 = vector.load %arg5[%c0_2, %c0_3] : memref<1x128xf32, #tpu.memory_space<vmem>>, vector<1x128xf32>
    %7 = vector.broadcast %6 : vector<1x128xf32> to vector<128x128xf32>
    %8 = arith.mulf %5, %7 : vector<128x128xf32>
    %cst = arith.constant dense<0.000000e+00> : vector<128xf32>
    %9 = vector.multi_reduction <add>, %8, %cst [1] : vector<128x128xf32> to vector<128xf32>
    %10 = vector.shape_cast %9 : vector<128xf32> to vector<128x1xf32>
    %c0_4 = arith.constant 0 : index
    %c0_5 = arith.constant 0 : index
    %11 = vector.load %arg4[%c0_4, %c0_5] : memref<1x256xf32, #tpu.memory_space<vmem>>, vector<1x256xf32>
    %12 = vector.broadcast %10 : vector<128x1xf32> to vector<128x256xf32>
    %13 = vector.broadcast %11 : vector<1x256xf32> to vector<128x256xf32>
    %14 = arith.addf %12, %13 : vector<128x256xf32>
    %c0_6 = arith.constant 0 : index
    %c0_7 = arith.constant 0 : index
    %15 = vector.load %arg3[%c0_6, %c0_7] : memref<128x256xbf16, #tpu.memory_space<vmem>>, vector<128x256xbf16>
    %16 = arith.extf %15 : vector<128x256xbf16> to vector<128x256xf32>
    %17 = arith.addf %14, %16 : vector<128x256xf32>
    %cst_8 = arith.constant 2.000000e-01 : f32
    %18 = vector.broadcast %cst_8 : f32 to vector<128x256xf32>
    %19 = arith.mulf %18, %17 : vector<128x256xf32>
    %20 = arith.maximumf %17, %19 : vector<128x256xf32>
    %cst_9 = arith.constant dense<0xFF800000> : vector<128xf32>
    %21 = vector.multi_reduction <maximumf>, %20, %cst_9 [1] : vector<128x256xf32> to vector<128xf32>
    %22 = vector.shape_cast %21 : vector<128xf32> to vector<128x1xf32>
    %23 = vector.broadcast %22 : vector<128x1xf32> to vector<128x256xf32>
    %24 = arith.subf %20, %23 : vector<128x256xf32>
    %25 = math.exp %24 : vector<128x256xf32>
    %cst_10 = arith.constant dense<0.000000e+00> : vector<128xf32>
    %26 = vector.multi_reduction <add>, %25, %cst_10 [1] : vector<128x256xf32> to vector<128xf32>
    %27 = vector.shape_cast %26 : vector<128xf32> to vector<128x1xf32>
    %28 = arith.truncf %25 : vector<128x256xf32> to vector<128x256xbf16>
    %cst_11 = arith.constant dense<0.000000e+00> : vector<128x128xf32>
    %29 = tpu.matmul %28, %2, %cst_11 {dimension_numbers = #tpu.dot_dimension_numbers<[1], [0], [0], [1], [0, 0, 1, 1], [], []>} : vector<128x256xbf16>, vector<256x128xbf16>, vector<128x128xf32> -> vector<128x128xf32>
    %30 = tpu.reciprocal %27 {approx = true} : vector<128x1xf32> -> vector<128x1xf32>
    %31 = vector.broadcast %30 : vector<128x1xf32> to vector<128x128xf32>
    %32 = arith.mulf %29, %31 : vector<128x128xf32>
    %c0_12 = arith.constant 0 : index
    %c0_13 = arith.constant 0 : index
    %33 = vector.load %arg6[%c0_12, %c0_13] : memref<1x128xf32, #tpu.memory_space<vmem>>, vector<1x128xf32>
    %34 = vector.broadcast %33 : vector<1x128xf32> to vector<128x128xf32>
    %35 = arith.addf %32, %34 : vector<128x128xf32>
    %cst_14 = arith.constant 0.000000e+00 : f32
    %36 = vector.broadcast %cst_14 : f32 to vector<128x128xf32>
    %37 = arith.subf %36, %35 : vector<128x128xf32>
    %38 = math.exp %37 : vector<128x128xf32>
    %cst_15 = arith.constant 1.000000e+00 : f32
    %39 = vector.broadcast %cst_15 : f32 to vector<128x128xf32>
    %40 = arith.addf %39, %38 : vector<128x128xf32>
    %41 = tpu.reciprocal %40 {approx = true} : vector<128x128xf32> -> vector<128x128xf32>
    %42 = arith.mulf %35, %41 : vector<128x128xf32>
    %c0_16 = arith.constant 0 : index
    %c0_17 = arith.constant 0 : index
    %43 = vector.load %arg2[%c0_16, %c0_17] : memref<128x128xf32, #tpu.memory_space<vmem>>, vector<128x128xf32>
    %44 = arith.addf %42, %43 : vector<128x128xf32>
    %c0_18 = arith.constant 0 : index
    %c0_19 = arith.constant 0 : index
    %45 = vector.load %arg7[%c0_18, %c0_19] : memref<128x128xf32, #tpu.memory_space<vmem>>, vector<128x128xf32>
    tpu.vector_store %arg7[%c0_18, %c0_19], %44 {strides = array<i32>} : memref<128x128xf32, #tpu.memory_space<vmem>>, vector<128x128xf32>,
    return
  }
  func.func @transform_0(%arg0: i32) -> (i32, i32) {
    %c0_i32 = arith.constant 0 : i32
    %c0_i32_0 = arith.constant 0 : i32
    %c0_i32_1 = arith.constant 0 : i32
    return %c0_i32, %c0_i32_0 : i32, i32
  }
  func.func @transform_1(%arg0: i32) -> (i32, i32) {
    %c0_i32 = arith.constant 0 : i32
    %c0_i32_0 = arith.constant 0 : i32
    return %arg0, %c0_i32 : i32, i32
  }
  func.func @transform_2(%arg0: i32) -> (i32, i32) {
    %c0_i32 = arith.constant 0 : i32
    %c0_i32_0 = arith.constant 0 : i32
    return %arg0, %c0_i32 : i32, i32
  }
  func.func @transform_3(%arg0: i32) -> (i32, i32) {
    %c0_i32 = arith.constant 0 : i32
    %c0_i32_0 = arith.constant 0 : i32
    %c0_i32_1 = arith.constant 0 : i32
    return %c0_i32, %c0_i32_0 : i32, i32
  }
  func.func @transform_4(%arg0: i32) -> (i32, i32) {
    %c0_i32 = arith.constant 0 : i32
    %c0_i32_0 = arith.constant 0 : i32
    %c0_i32_1 = arith.constant 0 : i32
    return %c0_i32, %c0_i32_0 : i32, i32
  }
  func.func @transform_5(%arg0: i32) -> (i32, i32) {
    %c0_i32 = arith.constant 0 : i32
    %c0_i32_0 = arith.constant 0 : i32
    %c0_i32_1 = arith.constant 0 : i32
    return %c0_i32, %c0_i32_0 : i32, i32
  }
  func.func @transform_6(%arg0: i32) -> (i32, i32) {
    %c0_i32 = arith.constant 0 : i32
    %c0_i32_0 = arith.constant 0 : i32
    return %arg0, %c0_i32 : i32, i32
  }
}

module attributes {stable_mosaic.version = 11 : i64} {
  func.func @_proj_kernel(%arg0: i32, %arg1: memref<128x128xf32, #tpu.memory_space<vmem>>, %arg2: memref<128x128xbf16, #tpu.memory_space<vmem>>, %arg3: memref<128x128xbf16, #tpu.memory_space<vmem>>) attributes {dimension_semantics = [#tpu.dimension_semantics<parallel>], iteration_bounds = array<i64: 2>, scalar_prefetch = 0 : i64, scratch_operands = 0 : i64, tpu.core_type = #tpu.core_type<tc>, window_params = [{transform_indices = @transform_0, window_bounds = array<i64: 128, 128>}, {pipeline_mode = #tpu.pipeline_mode<synchronous>, transform_indices = @transform_1, window_bounds = array<i64: 128, 128>}, {transform_indices = @transform_2, window_bounds = array<i64: 128, 128>}]} {
    %c0 = arith.constant 0 : index
    %c0_0 = arith.constant 0 : index
    %0 = vector.load %arg1[%c0, %c0_0] : memref<128x128xf32, #tpu.memory_space<vmem>>, vector<128x128xf32>
    %1 = arith.truncf %0 : vector<128x128xf32> to vector<128x128xbf16>
    %c0_1 = arith.constant 0 : index
    %c0_2 = arith.constant 0 : index
    %2 = vector.load %arg2[%c0_1, %c0_2] : memref<128x128xbf16, #tpu.memory_space<vmem>>, vector<128x128xbf16>
    %cst = arith.constant dense<0.000000e+00> : vector<128x128xf32>
    %3 = tpu.matmul %1, %2, %cst {dimension_numbers = #tpu.dot_dimension_numbers<[1], [0], [0], [1], [0, 0, 1, 1], [], []>} : vector<128x128xbf16>, vector<128x128xbf16>, vector<128x128xf32> -> vector<128x128xf32>
    %4 = arith.truncf %3 : vector<128x128xf32> to vector<128x128xbf16>
    %c0_3 = arith.constant 0 : index
    %c0_4 = arith.constant 0 : index
    %5 = vector.load %arg3[%c0_3, %c0_4] : memref<128x128xbf16, #tpu.memory_space<vmem>>, vector<128x128xbf16>
    tpu.vector_store %arg3[%c0_3, %c0_4], %4 {strides = array<i32>} : memref<128x128xbf16, #tpu.memory_space<vmem>>, vector<128x128xbf16>,
    return
  }
  func.func @transform_0(%arg0: i32) -> (i32, i32) {
    %c0_i32 = arith.constant 0 : i32
    %c0_i32_0 = arith.constant 0 : i32
    return %arg0, %c0_i32 : i32, i32
  }
  func.func @transform_1(%arg0: i32) -> (i32, i32) {
    %c0_i32 = arith.constant 0 : i32
    %c0_i32_0 = arith.constant 0 : i32
    %c0_i32_1 = arith.constant 0 : i32
    return %c0_i32, %c0_i32_0 : i32, i32
  }
  func.func @transform_2(%arg0: i32) -> (i32, i32) {
    %c0_i32 = arith.constant 0 : i32
    %c0_i32_0 = arith.constant 0 : i32
    return %arg0, %c0_i32 : i32, i32
  }
}

module attributes {stable_mosaic.version = 11 : i64} {
  func.func @_norm_pool_kernel(%arg0: i32, %arg1: memref<128x128xf32, #tpu.memory_space<vmem>>, %arg2: memref<1x4x128xf32, #tpu.memory_space<vmem>>, %arg3: memref<4x1xf32, #tpu.memory_space<vmem>>, %arg4: memref<4x1xf32, #tpu.memory_space<vmem>>, %arg5: memref<1x128xf32, #tpu.memory_space<vmem>>, %arg6: memref<1x128xf32, #tpu.memory_space<vmem>>, %arg7: memref<4x128xf32, #tpu.memory_space<vmem>>, %arg8: memref<4x256xf32, #tpu.memory_space<vmem>>) attributes {dimension_semantics = [#tpu.dimension_semantics<arbitrary>], iteration_bounds = array<i64: 2>, scalar_prefetch = 0 : i64, scratch_operands = 1 : i64, tpu.core_type = #tpu.core_type<tc>, window_params = [{transform_indices = @transform_0, window_bounds = array<i64: 128, 128>}, {transform_indices = @transform_1, window_bounds = array<i64: 1, 4, 128>}, {pipeline_mode = #tpu.pipeline_mode<synchronous>, transform_indices = @transform_2, window_bounds = array<i64: 4, 1>}, {pipeline_mode = #tpu.pipeline_mode<synchronous>, transform_indices = @transform_3, window_bounds = array<i64: 4, 1>}, {pipeline_mode = #tpu.pipeline_mode<synchronous>, transform_indices = @transform_4, window_bounds = array<i64: 1, 128>}, {pipeline_mode = #tpu.pipeline_mode<synchronous>, transform_indices = @transform_5, window_bounds = array<i64: 1, 128>}, {pipeline_mode = #tpu.pipeline_mode<synchronous>, transform_indices = @transform_6, window_bounds = array<i64: 4, 128>}]} {
    %c0_i32 = arith.constant 0 : i32
    %0 = arith.cmpi eq, %arg0, %c0_i32 : i32
    %1 = arith.extui %0 : i1 to i32
    %c0_i32_0 = arith.constant 0 : i32
    %2 = arith.cmpi ne, %1, %c0_i32_0 : i32
    scf.if %2 {
      %cst_10 = arith.constant 0.000000e+00 : f32
      %15 = vector.broadcast %cst_10 : f32 to vector<4x256xf32>
      %c0_11 = arith.constant 0 : index
      %c0_12 = arith.constant 0 : index
      %16 = vector.load %arg8[%c0_11, %c0_12] : memref<4x256xf32, #tpu.memory_space<vmem>>, vector<4x256xf32>
      tpu.vector_store %arg8[%c0_11, %c0_12], %15 {strides = array<i32>} : memref<4x256xf32, #tpu.memory_space<vmem>>, vector<4x256xf32>,
    } else {
    }
    %c0 = arith.constant 0 : index
    %c0_1 = arith.constant 0 : index
    %3 = vector.load %arg1[%c0, %c0_1] : memref<128x128xf32, #tpu.memory_space<vmem>>, vector<128x128xf32>
    %c0_2 = arith.constant 0 : index
    %c0_3 = arith.constant 0 : index
    %c0_4 = arith.constant 0 : index
    %4 = vector.load %arg2[%c0_2, %c0_3, %c0_4] : memref<1x4x128xf32, #tpu.memory_space<vmem>>, vector<1x4x128xf32>
    %5 = vector.shape_cast %4 : vector<1x4x128xf32> to vector<4x128xf32>
    %c0_5 = arith.constant 0 : index
    %c0_6 = arith.constant 0 : index
    %6 = vector.load %arg8[%c0_5, %c0_6] : memref<4x256xf32, #tpu.memory_space<vmem>>, vector<4x256xf32>
    %7 = arith.mulf %3, %3 : vector<128x128xf32>
    %8 = tpu.concatenate %3, %7 in 1 : vector<128x128xf32>, vector<128x128xf32> -> vector<128x256xf32>
    %cst = arith.constant dense<0.000000e+00> : vector<4x256xf32>
    %9 = tpu.matmul %5, %8, %cst {dimension_numbers = #tpu.dot_dimension_numbers<[1], [0], [0], [1], [0, 0, 1, 1], [], []>} : vector<4x128xf32>, vector<128x256xf32>, vector<4x256xf32> -> vector<4x256xf32>
    %10 = arith.addf %6, %9 : vector<4x256xf32>
    %c0_7 = arith.constant 0 : index
    %c0_8 = arith.constant 0 : index
    %11 = vector.load %arg8[%c0_7, %c0_8] : memref<4x256xf32, #tpu.memory_space<vmem>>, vector<4x256xf32>
    tpu.vector_store %arg8[%c0_7, %c0_8], %10 {strides = array<i32>} : memref<4x256xf32, #tpu.memory_space<vmem>>, vector<4x256xf32>,
    %c1_i32 = arith.constant 1 : i32
    %12 = arith.cmpi eq, %arg0, %c1_i32 : i32
    %13 = arith.extui %12 : i1 to i32
    %c0_i32_9 = arith.constant 0 : i32
    %14 = arith.cmpi ne, %13, %c0_i32_9 : i32
    scf.if %14 {
      %c0_10 = arith.constant 0 : index
      %c0_11 = arith.constant 0 : index
      %15 = vector.load %arg8[%c0_10, %c0_11] : memref<4x256xf32, #tpu.memory_space<vmem>>, vector<4x256xf32>
      %16 = vector.extract_strided_slice %15 {offsets = [0, 0], sizes = [4, 128], strides = [1, 1]} : vector<4x256xf32> to vector<4x128xf32>
      %17 = vector.extract_strided_slice %15 {offsets = [0, 128], sizes = [4, 128], strides = [1, 1]} : vector<4x256xf32> to vector<4x128xf32>
      %c0_12 = arith.constant 0 : index
      %c0_13 = arith.constant 0 : index
      %18 = vector.load %arg4[%c0_12, %c0_13] : memref<4x1xf32, #tpu.memory_space<vmem>>, vector<4x1xf32>
      %cst_14 = arith.constant dense<0.000000e+00> : vector<4xf32>
      %19 = vector.multi_reduction <add>, %16, %cst_14 [1] : vector<4x128xf32> to vector<4xf32>
      %20 = vector.shape_cast %19 : vector<4xf32> to vector<4x1xf32>
      %21 = arith.mulf %20, %18 : vector<4x1xf32>
      %cst_15 = arith.constant dense<0.000000e+00> : vector<4xf32>
      %22 = vector.multi_reduction <add>, %17, %cst_15 [1] : vector<4x128xf32> to vector<4xf32>
      %23 = vector.shape_cast %22 : vector<4xf32> to vector<4x1xf32>
      %24 = arith.mulf %23, %18 : vector<4x1xf32>
      %25 = arith.mulf %21, %21 : vector<4x1xf32>
      %26 = arith.subf %24, %25 : vector<4x1xf32>
      %cst_16 = arith.constant 9.99999974E-6 : f32
      %27 = vector.broadcast %cst_16 : f32 to vector<4x1xf32>
      %28 = arith.addf %26, %27 : vector<4x1xf32>
      %29 = math.rsqrt %28 : vector<4x1xf32>
      %c0_17 = arith.constant 0 : index
      %c0_18 = arith.constant 0 : index
      %30 = vector.load %arg3[%c0_17, %c0_18] : memref<4x1xf32, #tpu.memory_space<vmem>>, vector<4x1xf32>
      %31 = vector.broadcast %30 : vector<4x1xf32> to vector<4x128xf32>
      %32 = arith.mulf %16, %31 : vector<4x128xf32>
      %c0_19 = arith.constant 0 : index
      %c0_20 = arith.constant 0 : index
      %33 = vector.load %arg5[%c0_19, %c0_20] : memref<1x128xf32, #tpu.memory_space<vmem>>, vector<1x128xf32>
      %34 = vector.broadcast %21 : vector<4x1xf32> to vector<4x128xf32>
      %35 = arith.subf %32, %34 : vector<4x128xf32>
      %36 = vector.broadcast %29 : vector<4x1xf32> to vector<4x128xf32>
      %37 = arith.mulf %35, %36 : vector<4x128xf32>
      %38 = vector.broadcast %33 : vector<1x128xf32> to vector<4x128xf32>
      %39 = arith.mulf %38, %37 : vector<4x128xf32>
      %c0_21 = arith.constant 0 : index
      %c0_22 = arith.constant 0 : index
      %40 = vector.load %arg6[%c0_21, %c0_22] : memref<1x128xf32, #tpu.memory_space<vmem>>, vector<1x128xf32>
      %41 = vector.broadcast %40 : vector<1x128xf32> to vector<4x128xf32>
      %42 = arith.addf %39, %41 : vector<4x128xf32>
      %c0_23 = arith.constant 0 : index
      %c0_24 = arith.constant 0 : index
      %43 = vector.load %arg7[%c0_23, %c0_24] : memref<4x128xf32, #tpu.memory_space<vmem>>, vector<4x128xf32>
      tpu.vector_store %arg7[%c0_23, %c0_24], %42 {strides = array<i32>} : memref<4x128xf32, #tpu.memory_space<vmem>>, vector<4x128xf32>,
    } else {
    }
    return
  }
  func.func @transform_0(%arg0: i32) -> (i32, i32) {
    %c0_i32 = arith.constant 0 : i32
    %c0_i32_0 = arith.constant 0 : i32
    return %arg0, %c0_i32 : i32, i32
  }
  func.func @transform_1(%arg0: i32) -> (i32, i32, i32) {
    %c0_i32 = arith.constant 0 : i32
    %c0_i32_0 = arith.constant 0 : i32
    %c0_i32_1 = arith.constant 0 : i32
    return %arg0, %c0_i32, %c0_i32_0 : i32, i32, i32
  }
  func.func @transform_2(%arg0: i32) -> (i32, i32) {
    %c0_i32 = arith.constant 0 : i32
    %c0_i32_0 = arith.constant 0 : i32
    %c0_i32_1 = arith.constant 0 : i32
    return %c0_i32, %c0_i32_0 : i32, i32
  }
  func.func @transform_3(%arg0: i32) -> (i32, i32) {
    %c0_i32 = arith.constant 0 : i32
    %c0_i32_0 = arith.constant 0 : i32
    %c0_i32_1 = arith.constant 0 : i32
    return %c0_i32, %c0_i32_0 : i32, i32
  }
  func.func @transform_4(%arg0: i32) -> (i32, i32) {
    %c0_i32 = arith.constant 0 : i32
    %c0_i32_0 = arith.constant 0 : i32
    %c0_i32_1 = arith.constant 0 : i32
    return %c0_i32, %c0_i32_0 : i32, i32
  }
  func.func @transform_5(%arg0: i32) -> (i32, i32) {
    %c0_i32 = arith.constant 0 : i32
    %c0_i32_0 = arith.constant 0 : i32
    %c0_i32_1 = arith.constant 0 : i32
    return %c0_i32, %c0_i32_0 : i32, i32
  }
  func.func @transform_6(%arg0: i32) -> (i32, i32) {
    %c0_i32 = arith.constant 0 : i32
    %c0_i32_0 = arith.constant 0 : i32
    %c0_i32_1 = arith.constant 0 : i32
    return %c0_i32, %c0_i32_0 : i32, i32
  }
}

</mosaic_0001>

<bundles_post_ra>
// kernel: gat_forward.5
= control target key start
LH: loop header
LB: loop body
LE: loop exit
PB: predicated region body
PF: predicated region fallthrough
CT: control target
= control target key end

     0   :  { %7 = vsyncpa [#allocation3], 0  ;;  %s1015_s0 = inlined_call_operand.hbm [shape: f32[256,128], index: 0, kind: input, shape index: {}]   ;;  %s1016_s1 = inlined_call_operand.hbm [shape: bf16[128,128], index: 1, kind: input, shape index: {}]   ;;  %s1017_s2 = inlined_call_operand.vmem [shape: bf16[256,128], index: 2, kind: output, shape index: {}]  }
   0x1   :  { %9 = vsyncpa [#allocation3 + $0x1], 0 }
   0x2   :  { %10 = vsyncpa [#allocation5], 0  ;;  %s868_s9 = smov 0   ;;  %s870_s10 = smov 0  }
   0x3   :  { %s872_s11 = smov 0   ;;  %s874_s12 = smov 0  }
   0x4 LB: > { %s524_s13 = sadd.s32 4294967295, %s845_s12   ;;  %p36_p0 = scmp.ne.s32.totalorder %s837_s10, %s833_s9  ;;  %s845_s12 = sphi %s874_s12, %s1033_s12   ;;  %s841_s11 = sphi %s872_s11, %s1032_s11   ;;  %s837_s10 = sphi %s870_s10, %s1031_s10   ;;  %s833_s9 = sphi %s868_s9, %s1030_s9  }
   0x5   : > { %p890_p1 = scmp.eq.s32.totalorder %s524_s13, 0  ;;  %p526_p2 = scmp.ge.s32.totalorder %s845_s12, 1 }
   0x6   : > { %p94_p3 = scmp.lt.s32.totalorder %s845_s12, 3  ;;  %s847_s17 = smov [#allocation4]  }
   0x7   : > { %s1022_s14 = scalar_select %p890_p1, 1, 0 }
   0x8   : > { %p898_p4 = por %p890_p1, %p36_p0  ;;  %p902_p5 = pnand %p526_p2, %p94_p3 }
   0x9   : > { %s106_s18 = sshll.u32 %s847_s17, 4  ;;  %s915_s20 = sadd.s32 1, %s845_s12   ;;  %s107_s18 = int_to_ptr.vmem [resolvable:$true] %s106_s18 }
   0xa   : > { %s1023_s15 = scalar_select %p898_p4, 1, 0 }
   0xb   : > { %s1024_s16 = scalar_select %p902_p5, 1, 0 }
   0xc   : > { %p697_p6 = pneg %p902_p5  ;;  %s23_s21 = sadd.s32 1, %s841_s11 }
   0xd   : > { %s20_s22 = ssub.s32 %s845_s12, %s915_s20  ;;  %s764_s23 = scalar_lea.vmem %s107_s18, 1024 }
   0xe   : > { %p910_p7 = pnand %p697_p6, %p890_p1  ;;  %p765_p9 = scmp.ne.s32.totalorder %s107_s18, %s764_s23 }
   0xf   : > { %p772_p12 = scmp.lt.s32.totalorder %s107_s18, %s107_s18  ;;  %p773_p13 = scmp.lt.s32.totalorder %s764_s23, %s764_s23 }
  0x10   : > { %p755_p8 = pneg %p910_p7 }
  0x11   : > { %p774_p0 = por %p773_p13, %p772_p12 }
  0x12   : > { %p767_p10 = pnand %p765_p9, %p755_p8 }
  0x14   : > { %p768_p11 = pneg %p767_p10 }
  0x16   : > { %p775_p2 = pnand %p774_p0, %p768_p11 }
  0x18   : > { %778 = shalt.err (!%p775_p2)
}
  0x19   : > { %s848_s24 = smov 64   ;;  %s849_s25 = smov 4  }
  0x1a   : > { %700 = dma.hbm_to_vmem [thread:$0]  (!%p910_p7), %s1016_s1, 1024, %s107_s18, [#allocation5], %s848_s24, %s848_s24, %s849_s25  }
  0x1b   : > { %p21_p3 = scmp.eq.s32.totalorder %s20_s22, 0  ;;  %p30_p6 = scmp.ne.s32.totalorder %s841_s11, %s837_s10 }
  0x1c   : > { %p31_p8 = scmp.eq.s32.totalorder %s845_s12, 0  ;;  %p706_p9 = scmp.lt.s32.totalorder %s845_s12, 2 }
  0x1d   : > { %s932_s28 = scalar_select %p21_p3, %s841_s11, %s23_s21  }
  0x1e   : > { %p32_p10 = por %p31_p8, %p30_p6  ;;  %s120_s29 = sand.u32 1, %s841_s11  }
  0x1f   : > { %s529_s30 = sshll.u32 %s120_s29, 7  ;;  %s563_s3 = sshll.u32 %s845_s12, 11 }
  0x20   : > { %s939_s6 = scalar_lea.hbm %s1015_s0, %s563_s3  ;;  %s124_s7 = scalar_lea.vmem [#allocation2], %s529_s30 }
  0x21   : > { %s131_s8 = sshll.u32 %s124_s7, 4  ;;  %p943_p7 = pnand %p706_p9, %p32_p10  ;;  %s941_s8 = int_to_ptr.vmem [resolvable:$true] %s131_s8 }
  0x22   : > { %s947_s17 = scalar_lea.sflag [#allocation3], %s120_s29  ;;  %s779_s18 = scalar_lea.hbm %s939_s6, 2048 }
  0x23   : > { %p780_p11 = scmp.ne.s32.totalorder %s939_s6, %s779_s18  ;;  %p781_p12 = pneg %p943_p7 }
  0x24   : > { %s784_s22 = scalar_lea.hbm %s1015_s0, 4096  ;;  %p785_p2 = scmp.lt.s32.totalorder %s939_s6, %s1015_s0 }
  0x25   : > { %p782_p13 = pnand %p781_p12, %p780_p11  ;;  %p786_p3 = scmp.lt.s32.totalorder %s784_s22, %s779_s18 }
  0x27   : > { %p783_p0 = pneg %p782_p13  ;;  %p787_p6 = por %p786_p3, %p785_p2 }
  0x29   : > { %p788_p8 = pnand %p787_p6, %p783_p0 }
  0x2b   : > { %791 = shalt.err (!%p788_p8)
}
  0x2c   : > { %s792_s25 = scalar_lea.vmem %s941_s8, 2048  ;;  %s850_s26 = smov [#allocation2]  }
  0x2d   : > { %p793_p9 = scmp.ne.s32.totalorder %s941_s8, %s792_s25  ;;  %s797_s27 = sshll.u32 %s850_s26, 4  ;;  %s798_s27 = int_to_ptr.vmem [resolvable:$false] %s797_s27 }
  0x2e   : > { %s799_s29 = scalar_lea.vmem %s798_s27, 4096  ;;  %p800_p13 = scmp.lt.s32.totalorder %s941_s8, %s798_s27 }
  0x2f   : > { %p795_p10 = pnand %p793_p9, %p781_p12  ;;  %p801_p1 = scmp.lt.s32.totalorder %s799_s29, %s792_s25 }
  0x31   : > { %p796_p11 = pneg %p795_p10  ;;  %p802_p4 = por %p801_p1, %p800_p13 }
  0x33   : > { %p803_p5 = pnand %p802_p4, %p796_p11 }
  0x35   : > { %806 = shalt.err (!%p803_p5)
}
  0x36   : > { %s851_s30 = smov 128   ;;  %s852_s3 = smov 8  }
  0x37   : > { %704 = dma.hbm_to_vmem [thread:$0]  (!%p943_p7), %s939_s6, 2048, %s941_s8, %s947_s17, %s851_s30, %s851_s30, %s852_s3  }
  0x38   : > { %p1027_p12 = scmp.ne.s32.totalorder %s1024_s16, 0 }
  0x39   : > { %s145_s4 = sand.u32 (!%p1027_p12), 1, %s837_s10   ;;  %p1028_p1 = scmp.ne.s32.totalorder (!%p1027_p12), %s1023_s15, 0 }
  0x3a   : > { %143 = sbr.rel (%p1027_p12) target bundleno = 310 (0x136), region = 28  ;;  %s533_s5 = sshll.u32 (!%p1027_p12), %s145_s4, 7 }
  0x3b   : > { %s146_s7 = scalar_lea.sflag (!%p1027_p12), [#allocation3], %s145_s4  ;;  %s971_s18 = scalar_lea.vmem (!%p1027_p12), [#allocation2], %s533_s5 }
  0x3f   : > { %824 = dma.done.wait (%p1028_p1), %s146_s7, 2048  }
  0x40   : > { %826 = vsyncadd (%p1028_p1), %s146_s7, 4294965248  ;;  %p1029_p4 = scmp.ne.s32.totalorder %s1022_s14, 0 }
  0x42   : > { %828 = dma.done.wait (%p1029_p4), [#allocation5], 1024  }
  0x43   : > { %830 = vsyncadd (%p1029_p4), [#allocation5], 4294966272  ;;  %v745_v0 = vld [vmem:[#allocation4 + $0x38] sm:$0xff]   ;;  %v746_v1 = vld [vmem:[#allocation4 + $0x30] sm:$0xff]   ;;  %s535_s14 = sshll.u32 %s524_s13, 4 }
  0x44   : > { %643 = vmatprep.subr.bf16.mxu0 %v745_v0  ;;  %675 = vmatprep.subr.bf16.mxu1 %v745_v0  ;;  %v747_v2 = vld [vmem:[#allocation4 + $0x28] sm:$0xff]   ;;  %v748_v3 = vld [vmem:[#allocation4 + $0x20] sm:$0xff]   ;;  %v749_v10 = vld [vmem:[#allocation4 + $0x18] sm:$0xff]   ;;  %p176_p5 = scmp.lt.s32.totalorder %s535_s14, 31 }
  0x45   : > { %644 = vmatpush3.bf16.msra.mxu0 %v745_v0  ;;  %683 = vmatpush3.bf16.msra.mxu1 %v745_v0  ;;  %v182_v4 = vld [vmem:[%s971_s18] sm:$0xff]  ;;  %v183_v5 = vld [vmem:[%s971_s18 + $0x8] sm:$0xff]  ;;  %v750_v11 = vld [vmem:[#allocation4 + $0x10] sm:$0xff]  }
  0x46   : > { %645 = vmatprep.subr.bf16.mxu0 %v746_v1  ;;  %676 = vmatprep.subr.bf16.mxu1 %v746_v1  ;;  %v190_v6 = vld [vmem:[%s971_s18 + $0x40] sm:$0xff]  ;;  %v198_v7 = vpack.c.bf16 %v183_v5, %v182_v4  ;;  %v191_v8 = vld [vmem:[%s971_s18 + $0x48] sm:$0xff]  ;;  %v184_v14 = vld [vmem:[%s971_s18 + $0x10] sm:$0xff]  ;;  %s1035_s14 = smov (!%p176_p5, %s535_s14), 31 }
  0x47   : > { %v202_v9 = vpack.c.bf16 %v191_v8, %v190_v6  ;;  %v751_v12 = vld [vmem:[#allocation4 + $0x8] sm:$0xff]   ;;  %v752_v13 = vld [vmem:[#allocation4] sm:$0xff]   ;;  %v185_v15 = vld [vmem:[%s971_s18 + $0x18] sm:$0xff]  ;;  %s536_s15 = sshll.u32 %s1035_s14, 2 }
  0x48   : > { %659 = vmatprep.mubr.bf16.mxu0 %v198_v7  ;;  %v192_v16 = vld [vmem:[%s971_s18 + $0x50] sm:$0xff]  ;;  %v193_v17 = vld [vmem:[%s971_s18 + $0x58] sm:$0xff]  ;;  %v186_v18 = vld [vmem:[%s971_s18 + $0x20] sm:$0xff]  ;;  %v199_v22 = vpack.c.bf16 %v185_v15, %v184_v14  ;;  %s179_s8 = scalar_lea.vmem %s1017_s2, %s536_s15 }
  0x49   : > { %646 = vmatpush3.bf16.msra.mxu0 %v746_v1  ;;  %684 = vmatpush3.bf16.msra.mxu1 %v746_v1  ;;  %v187_v19 = vld [vmem:[%s971_s18 + $0x28] sm:$0xff]  ;;  %v194_v20 = vld [vmem:[%s971_s18 + $0x60] sm:$0xff]  ;;  %v203_v23 = vpack.c.bf16 %v193_v17, %v192_v16  ;;  %v188_v26 = vld [vmem:[%s971_s18 + $0x30] sm:$0xff] }
  0x4a   : > { %647 = vmatprep.subr.bf16.mxu0 %v747_v2  ;;  %677 = vmatprep.subr.bf16.mxu1 %v747_v2  ;;  %v195_v21 = vld [vmem:[%s971_s18 + $0x68] sm:$0xff]  ;;  %v200_v24 = vpack.c.bf16 %v187_v19, %v186_v18  ;;  %v189_v27 = vld [vmem:[%s971_s18 + $0x38] sm:$0xff]  ;;  %v196_v28 = vld [vmem:[%s971_s18 + $0x70] sm:$0xff] }
  0x4b   : > { %667 = vmatprep.mubr.bf16.mxu1 %v202_v9  ;;  %v204_v25 = vpack.c.bf16 %v195_v21, %v194_v20  ;;  %v197_v29 = vld [vmem:[%s971_s18 + $0x78] sm:$0xff]  ;;  %v201_v30 = vpack.c.bf16 %v189_v27, %v188_v26 }
  0x4c   : > { %v205_v31 = vpack.c.bf16 %v197_v29, %v196_v28 }
  0x4d   : > { %648 = vmatpush3.bf16.msra.mxu0 %v747_v2  ;;  %685 = vmatpush3.bf16.msra.mxu1 %v747_v2 }
  0x4e   : > { %649 = vmatprep.subr.bf16.mxu0 %v748_v3  ;;  %678 = vmatprep.subr.bf16.mxu1 %v748_v3 }
  0x51   : > { %650 = vmatpush3.bf16.msra.mxu0 %v748_v3  ;;  %686 = vmatpush3.bf16.msra.mxu1 %v748_v3 }
  0x52   : > { %651 = vmatprep.subr.bf16.mxu0 %v749_v10  ;;  %679 = vmatprep.subr.bf16.mxu1 %v749_v10 }
  0x55   : > { %652 = vmatpush3.bf16.msra.mxu0 %v749_v10  ;;  %687 = vmatpush3.bf16.msra.mxu1 %v749_v10 }
  0x56   : > { %653 = vmatprep.subr.bf16.mxu0 %v750_v11  ;;  %680 = vmatprep.subr.bf16.mxu1 %v750_v11 }
  0x59   : > { %654 = vmatpush3.bf16.msra.mxu0 %v750_v11  ;;  %688 = vmatpush3.bf16.msra.mxu1 %v750_v11 }
  0x5a   : > { %655 = vmatprep.subr.bf16.mxu0 %v751_v12  ;;  %681 = vmatprep.subr.bf16.mxu1 %v751_v12 }
  0x5d   : > { %656 = vmatpush3.bf16.msra.mxu0 %v751_v12  ;;  %689 = vmatpush3.bf16.msra.mxu1 %v751_v12 }
  0x5e   : > { %657 = vmatprep.subr.bf16.mxu0 %v752_v13  ;;  %682 = vmatprep.subr.bf16.mxu1 %v752_v13 }
  0x61   : > { %658 = vmatpush3.bf16.msra.mxu0 %v752_v13  ;;  %690 = vmatpush3.bf16.msra.mxu1 %v752_v13 }
  0x64   : > { %660 = vmatmul.mubr.bf16.vlgmr.msra.gmra.mxu0 %v199_v22  ;;  %668 = vmatmul.mubr.bf16.vlgmr.msra.gmra.mxu1 %v203_v23 }
  0x65   : > { %663 = vmatprep.mubr.bf16.mxu0 %v200_v24  ;;  %671 = vmatprep.mubr.bf16.mxu1 %v204_v25 }
  0x6c   : > { %664 = vmatmul.mubr.bf16.gmra.mxu0 %v201_v30  ;;  %672 = vmatmul.mubr.bf16.gmra.mxu1 %v205_v31 }
 0x124   : > { %v661_v32 = vpop.f32.mrf.mxu0  ;;  %v669_v33 = vpop.f32.mrf.mxu1 }
 0x126   : > { %v304_v34 = vpop.f32.mrf.mxu0  ;;  %v336_v35 = vpop.f32.mrf.mxu1 }
 0x128   : > { %v662_v36 = vpop.f32.mrf.mxu0  ;;  %v670_v37 = vpop.f32.mrf.mxu1 }
 0x129   : > { %v588_v38 = vpack.c.bf16 %v662_v36, %v661_v32  ;;  %v608_v39 = vpack.c.bf16 %v670_v37, %v669_v33 }
 0x12a   : > { %v307_v40 = vpop.f32.mrf.mxu0  ;;  %v339_v41 = vpop.f32.mrf.mxu1 }
 0x12b   : > { %620 = vst [vmem:[%s179_s8 + $0x8] sm:$0xff] %v588_v38   ;;  %624 = vst [vmem:[%s179_s8 + $0x28] sm:$0xff] %v608_v39   ;;  %v583_v42 = vpack.c.bf16 %v307_v40, %v304_v34  ;;  %v603_v43 = vpack.c.bf16 %v339_v41, %v336_v35 }
 0x12c   : > { %v665_v44 = vpop.f32.mrf.mxu0  ;;  %v673_v45 = vpop.f32.mrf.mxu1 }
 0x12d   : > { %584 = vst [vmem:[%s179_s8] sm:$0xff] %v583_v42   ;;  %623 = vst [vmem:[%s179_s8 + $0x20] sm:$0xff] %v603_v43  }
 0x12e   : > { %v320_v46 = vpop.f32.mrf.mxu0  ;;  %v352_v47 = vpop.f32.mrf.mxu1 }
 0x130   : > { %v666_v48 = vpop.f32.mrf.mxu0  ;;  %v674_v49 = vpop.f32.mrf.mxu1 }
 0x131   : > { %v598_v50 = vpack.c.bf16 %v666_v48, %v665_v44  ;;  %v618_v51 = vpack.c.bf16 %v674_v49, %v673_v45 }
 0x132   : > { %v323_v52 = vpop.f32.mrf.mxu0  ;;  %v355_v53 = vpop.f32.mrf.mxu1 }
 0x133   : > { %622 = vst [vmem:[%s179_s8 + $0x18] sm:$0xff] %v598_v50   ;;  %626 = vst [vmem:[%s179_s8 + $0x38] sm:$0xff] %v618_v51   ;;  %v593_v54 = vpack.c.bf16 %v323_v52, %v320_v46  ;;  %v613_v55 = vpack.c.bf16 %v355_v53, %v352_v47 }
 0x135   : > { %621 = vst [vmem:[%s179_s8 + $0x10] sm:$0xff] %v593_v54   ;;  %625 = vst [vmem:[%s179_s8 + $0x30] sm:$0xff] %v613_v55  }
 0x136 PF: > { %p13_p7 = scmp.ge.s32.totalorder %s915_s20, 4   ;;  %s1030_s9 = smov %s837_s10 }
 0x137   : > { %s1031_s10 = smov %s841_s11  ;;  %s1032_s11 = smov %s932_s28 }
 0x138   : > { %s1033_s12 = smov %s915_s20  ;;  %15 = sbr.rel (!%p13_p7) target bundleno = 4 (0x4), region = 72 }
 0x13d   :  { %469 = vsyncpa [#allocation3], 1 }
 0x13e   :  { %471 = vsyncpa [#allocation3 + $0x1], 1 }
 0x13f   :  { %472 = vsyncpa [#allocation5], 1 }

// kernel: gat_forward.7
= control target key start
LH: loop header
LB: loop body
LE: loop exit
PB: predicated region body
PF: predicated region fallthrough
CT: control target
= control target key end

     0   :  { %s670_s9 = smov 0   ;;  %s733_s0 = inlined_call_operand.vmem [shape: f32[256,128], index: 0, kind: input, shape index: {}]   ;;  %s734_s1 = inlined_call_operand.vmem [shape: bf16[128,128], index: 1, kind: input, shape index: {}]   ;;  %s735_s2 = inlined_call_operand.vmem [shape: bf16[256,128], index: 2, kind: output, shape index: {}]  }
   0x1 LB: > { %s469_s10 = sadd.s32 4294967295, %s653_s9   ;;  %p473_p0 = scmp.ge.s32.totalorder %s653_s9, 1  ;;  %s653_s9 = sphi %s670_s9, %s12_s9  }
   0x2   : > { %p113_p1 = scmp.lt.s32.totalorder %s653_s9, 3 }
   0x4   : > { %p114_p2 = pnand %p473_p0, %p113_p1 }
   0x5   : > { %s474_s13 = sshll.u32 (!%p114_p2), %s469_s10, 4 }
   0x6   : > { %117 = sbr.rel (%p114_p2) target bundleno = 254 (0xfe), region = 28  ;;  %p136_p3 = scmp.lt.s32.totalorder (!%p114_p2), %s474_s13, 31 }
   0xb   : > { %v639_v0 = vld [vmem:[%s734_s1 + $0x38] sm:$0xff]   ;;  %v640_v1 = vld [vmem:[%s734_s1 + $0x30] sm:$0xff]   ;;  %s737_s13 = smov (!%p136_p3, %s474_s13), 31  ;;  %v641_v2 = vld [vmem:[%s734_s1 + $0x28] sm:$0xff]  }
   0xc   : > { %583 = vmatprep.subr.bf16.mxu0 %v639_v0  ;;  %615 = vmatprep.subr.bf16.mxu1 %v639_v0  ;;  %s475_s18 = sshll.u32 %s737_s13, 3  ;;  %v642_v3 = vld [vmem:[%s734_s1 + $0x20] sm:$0xff]   ;;  %v643_v10 = vld [vmem:[%s734_s1 + $0x18] sm:$0xff]   ;;  %v644_v11 = vld [vmem:[%s734_s1 + $0x10] sm:$0xff]   ;;  %s477_s4 = sshll.u32 %s737_s13, 2 }
   0xd   : > { %584 = vmatpush3.bf16.msra.mxu0 %v639_v0  ;;  %623 = vmatpush3.bf16.msra.mxu1 %v639_v0  ;;  %s693_s21 = scalar_lea.vmem %s733_s0, %s475_s18  ;;  %v645_v12 = vld [vmem:[%s734_s1 + $0x8] sm:$0xff]   ;;  %v646_v13 = vld [vmem:[%s734_s1] sm:$0xff]   ;;  %s145_s7 = scalar_lea.vmem %s735_s2, %s477_s4 }
   0xe   : > { %585 = vmatprep.subr.bf16.mxu0 %v640_v1  ;;  %616 = vmatprep.subr.bf16.mxu1 %v640_v1  ;;  %v148_v4 = vld [vmem:[%s693_s21] sm:$0xff]  ;;  %v149_v5 = vld [vmem:[%s693_s21 + $0x8] sm:$0xff]  ;;  %v150_v14 = vld [vmem:[%s693_s21 + $0x10] sm:$0xff] }
   0xf   : > { %v156_v6 = vld [vmem:[%s693_s21 + $0x40] sm:$0xff]  ;;  %v164_v7 = vpack.c.bf16 %v149_v5, %v148_v4  ;;  %v157_v8 = vld [vmem:[%s693_s21 + $0x48] sm:$0xff]  ;;  %v151_v15 = vld [vmem:[%s693_s21 + $0x18] sm:$0xff] }
  0x10   : > { %v168_v9 = vpack.c.bf16 %v157_v8, %v156_v6  ;;  %v158_v16 = vld [vmem:[%s693_s21 + $0x50] sm:$0xff]  ;;  %v159_v17 = vld [vmem:[%s693_s21 + $0x58] sm:$0xff]  ;;  %v152_v18 = vld [vmem:[%s693_s21 + $0x20] sm:$0xff]  ;;  %v165_v22 = vpack.c.bf16 %v151_v15, %v150_v14 }
  0x11   : > { %586 = vmatpush3.bf16.msra.mxu0 %v640_v1  ;;  %624 = vmatpush3.bf16.msra.mxu1 %v640_v1  ;;  %v153_v19 = vld [vmem:[%s693_s21 + $0x28] sm:$0xff]  ;;  %v160_v20 = vld [vmem:[%s693_s21 + $0x60] sm:$0xff]  ;;  %v169_v23 = vpack.c.bf16 %v159_v17, %v158_v16  ;;  %v154_v26 = vld [vmem:[%s693_s21 + $0x30] sm:$0xff] }
  0x12   : > { %587 = vmatprep.subr.bf16.mxu0 %v641_v2  ;;  %617 = vmatprep.subr.bf16.mxu1 %v641_v2  ;;  %v161_v21 = vld [vmem:[%s693_s21 + $0x68] sm:$0xff]  ;;  %v166_v24 = vpack.c.bf16 %v153_v19, %v152_v18  ;;  %v155_v27 = vld [vmem:[%s693_s21 + $0x38] sm:$0xff]  ;;  %v162_v28 = vld [vmem:[%s693_s21 + $0x70] sm:$0xff] }
  0x13   : > { %599 = vmatprep.mubr.bf16.mxu0 %v164_v7  ;;  %607 = vmatprep.mubr.bf16.mxu1 %v168_v9  ;;  %v170_v25 = vpack.c.bf16 %v161_v21, %v160_v20  ;;  %v163_v29 = vld [vmem:[%s693_s21 + $0x78] sm:$0xff]  ;;  %v167_v30 = vpack.c.bf16 %v155_v27, %v154_v26 }
  0x14   : > { %v171_v31 = vpack.c.bf16 %v163_v29, %v162_v28 }
  0x15   : > { %588 = vmatpush3.bf16.msra.mxu0 %v641_v2  ;;  %625 = vmatpush3.bf16.msra.mxu1 %v641_v2 }
  0x16   : > { %589 = vmatprep.subr.bf16.mxu0 %v642_v3  ;;  %618 = vmatprep.subr.bf16.mxu1 %v642_v3 }
  0x19   : > { %590 = vmatpush3.bf16.msra.mxu0 %v642_v3  ;;  %626 = vmatpush3.bf16.msra.mxu1 %v642_v3 }
  0x1a   : > { %591 = vmatprep.subr.bf16.mxu0 %v643_v10  ;;  %619 = vmatprep.subr.bf16.mxu1 %v643_v10 }
  0x1d   : > { %592 = vmatpush3.bf16.msra.mxu0 %v643_v10  ;;  %627 = vmatpush3.bf16.msra.mxu1 %v643_v10 }
  0x1e   : > { %593 = vmatprep.subr.bf16.mxu0 %v644_v11  ;;  %620 = vmatprep.subr.bf16.mxu1 %v644_v11 }
  0x21   : > { %594 = vmatpush3.bf16.msra.mxu0 %v644_v11  ;;  %628 = vmatpush3.bf16.msra.mxu1 %v644_v11 }
  0x22   : > { %595 = vmatprep.subr.bf16.mxu0 %v645_v12  ;;  %621 = vmatprep.subr.bf16.mxu1 %v645_v12 }
  0x25   : > { %596 = vmatpush3.bf16.msra.mxu0 %v645_v12  ;;  %629 = vmatpush3.bf16.msra.mxu1 %v645_v12 }
  0x26   : > { %597 = vmatprep.subr.bf16.mxu0 %v646_v13  ;;  %622 = vmatprep.subr.bf16.mxu1 %v646_v13 }
  0x29   : > { %598 = vmatpush3.bf16.msra.mxu0 %v646_v13  ;;  %630 = vmatpush3.bf16.msra.mxu1 %v646_v13 }
  0x2c   : > { %600 = vmatmul.mubr.bf16.vlgmr.msra.gmra.mxu0 %v165_v22  ;;  %608 = vmatmul.mubr.bf16.vlgmr.msra.gmra.mxu1 %v169_v23 }
  0x2d   : > { %603 = vmatprep.mubr.bf16.mxu0 %v166_v24  ;;  %611 = vmatprep.mubr.bf16.mxu1 %v170_v25 }
  0x34   : > { %604 = vmatmul.mubr.bf16.gmra.mxu0 %v167_v30  ;;  %612 = vmatmul.mubr.bf16.gmra.mxu1 %v171_v31 }
  0xec   : > { %v601_v32 = vpop.f32.mrf.mxu0  ;;  %v609_v33 = vpop.f32.mrf.mxu1 }
  0xee   : > { %v270_v34 = vpop.f32.mrf.mxu0  ;;  %v302_v35 = vpop.f32.mrf.mxu1 }
  0xf0   : > { %v602_v36 = vpop.f32.mrf.mxu0  ;;  %v610_v37 = vpop.f32.mrf.mxu1 }
  0xf1   : > { %v528_v38 = vpack.c.bf16 %v602_v36, %v601_v32  ;;  %v548_v39 = vpack.c.bf16 %v610_v37, %v609_v33 }
  0xf2   : > { %v273_v40 = vpop.f32.mrf.mxu0  ;;  %v305_v41 = vpop.f32.mrf.mxu1 }
  0xf3   : > { %560 = vst [vmem:[%s145_s7 + $0x8] sm:$0xff] %v528_v38   ;;  %564 = vst [vmem:[%s145_s7 + $0x28] sm:$0xff] %v548_v39   ;;  %v523_v42 = vpack.c.bf16 %v273_v40, %v270_v34  ;;  %v543_v43 = vpack.c.bf16 %v305_v41, %v302_v35 }
  0xf4   : > { %v605_v44 = vpop.f32.mrf.mxu0  ;;  %v613_v45 = vpop.f32.mrf.mxu1 }
  0xf5   : > { %524 = vst [vmem:[%s145_s7] sm:$0xff] %v523_v42   ;;  %563 = vst [vmem:[%s145_s7 + $0x20] sm:$0xff] %v543_v43  }
  0xf6   : > { %v286_v46 = vpop.f32.mrf.mxu0  ;;  %v318_v47 = vpop.f32.mrf.mxu1 }
  0xf8   : > { %v606_v48 = vpop.f32.mrf.mxu0  ;;  %v614_v49 = vpop.f32.mrf.mxu1 }
  0xf9   : > { %v538_v50 = vpack.c.bf16 %v606_v48, %v605_v44  ;;  %v558_v51 = vpack.c.bf16 %v614_v49, %v613_v45 }
  0xfa   : > { %v289_v52 = vpop.f32.mrf.mxu0  ;;  %v321_v53 = vpop.f32.mrf.mxu1 }
  0xfb   : > { %562 = vst [vmem:[%s145_s7 + $0x18] sm:$0xff] %v538_v50   ;;  %566 = vst [vmem:[%s145_s7 + $0x38] sm:$0xff] %v558_v51   ;;  %v533_v54 = vpack.c.bf16 %v289_v52, %v286_v46  ;;  %v553_v55 = vpack.c.bf16 %v321_v53, %v318_v47 }
  0xfd   : > { %561 = vst [vmem:[%s145_s7 + $0x10] sm:$0xff] %v533_v54   ;;  %565 = vst [vmem:[%s145_s7 + $0x30] sm:$0xff] %v553_v55  }
  0xfe PF: > { %s12_s9 = sadd.s32 1, %s653_s9  }
  0xff   : > { %p9_p4 = scmp.ge.s32.totalorder %s12_s9, 4  }
 0x101   :  { %11 = sbr.rel (!%p9_p4) target bundleno = 1 (0x1), region = 58 }

// kernel: gat_forward.6
= control target key start
LH: loop header
LB: loop body
LE: loop exit
PB: predicated region body
PF: predicated region fallthrough
CT: control target
= control target key end

     0   :  { %s1644_s21 = smov 0   ;;  %s2182_s0 = inlined_call_operand.vmem [shape: bf16[256,128], index: 0, kind: input, shape index: {}]   ;;  %s2183_s1 = inlined_call_operand.vmem [shape: f32[256,128], index: 1, kind: input, shape index: {}]   ;;  %s2184_s2 = inlined_call_operand.vmem [shape: bf16[256,256], index: 2, kind: input, shape index: {}]   ;;  %s2185_s3 = inlined_call_operand.vmem [shape: f32[1,256], index: 3, kind: input, shape index: {}]   ;;  %s2186_s4 = inlined_call_operand.vmem [shape: f32[1,128], index: 4, kind: input, shape index: {}]   ;;  %s2187_s5 = inlined_call_operand.vmem [shape: f32[1,128], index: 5, kind: input, shape index: {}]   ;;  %s2188_s6 = inlined_call_operand.vmem [shape: f32[256,128], index: 6, kind: output, shape index: {}]  }
   0x1 LB: > { %s1263_s22 = sadd.s32 4294967295, %s1607_s21   ;;  %p1267_p0 = scmp.ge.s32.totalorder %s1607_s21, 1  ;;  %s1607_s21 = sphi %s1644_s21, %s16_s21  }
   0x2   : > { %p225_p1 = scmp.lt.s32.totalorder %s1607_s21, 3 }
   0x4   : > { %p226_p2 = pnand %p1267_p0, %p225_p1 }
   0x5   : > { %s1275_s23 = sshll.u32 (!%p226_p2), %s1263_s22, 7  ;;  %s1268_s15 = sshll.u32 (!%p226_p2), %s1263_s22, 4 }
   0x6   : > { %229 = sbr.rel (%p226_p2) target bundleno = 606 (0x25e), region = 44  ;;  %s314_s24 = sshra.s32 (!%p226_p2), %s1275_s23, 3 }
   0x7   : > { %s1276_s25 = sshll.u32 (!%p226_p2), %s314_s24, 2  ;;  %p262_p3 = scmp.lt.s32.totalorder (!%p226_p2), %s1268_s15, 31 }
   0x8   : > { %s1657_s28 = scalar_lea.vmem (!%p226_p2), %s2182_s0, %s1276_s25 }
   0xb   : > { %v1299_v0 = vld [vmem:[%s1657_s28] sm:$0xff]   ;;  %v1330_v7 = vld [vmem:[%s1657_s28 + $0x8] sm:$0xff]   ;;  %v1331_v19 = vld [vmem:[%s1657_s28 + $0x10] sm:$0xff]   ;;  %v407_v45 = vlaneseq  ;;  %s2192_s15 = smov (!%p262_p3, %s1268_s15), 31 }
   0xc   : > { %v1277_v1 = vld [vmem:[%s2186_s4] ss:$0 sm:$0xff]  ;;  %v1300_v3 = vunpack.c.l.bf16 %v1299_v0  ;;  %v1301_v5 = vunpack.c.h.bf16 %v1299_v0  ;;  %v1334_v10 = vld [vmem:[%s1657_s28 + $0x28] sm:$0xff]   ;;  %v1304_v13 = vunpack.c.l.bf16 %v1330_v7  ;;  %v1305_v14 = vunpack.c.h.bf16 %v1330_v7  ;;  %v1335_v24 = vld [vmem:[%s1657_s28 + $0x30] sm:$0xff]   ;;  %s1684_s16 = sshll.u32 %s2192_s15, 3 }
   0xd   : > { %v1333_v2 = vld [vmem:[%s1657_s28 + $0x20] sm:$0xff]   ;;  %v1320_v17 = vunpack.c.l.bf16 %v1334_v10  ;;  %v1321_v18 = vunpack.c.h.bf16 %v1334_v10  ;;  %v1308_v22 = vunpack.c.l.bf16 %v1331_v19  ;;  %v1309_v23 = vunpack.c.h.bf16 %v1331_v19  ;;  %v1332_v29 = vld [vmem:[%s1657_s28 + $0x18] sm:$0xff]   ;;  %v1427_v43 = vld [vmem:[%s2182_s0 + $0x70] sm:$0xff]   ;;  %s1690_s19 = scalar_lea.vmem %s2184_s2, %s1684_s16  ;;  %s2117_s29 = scalar_lea.vmem %s2183_s1, %s1684_s16 }
   0xe   : > { %v1316_v4 = vunpack.c.l.bf16 %v1333_v2  ;;  %v1317_v6 = vunpack.c.h.bf16 %v1333_v2  ;;  %v357_v8 = vmul.f32 %v1300_v3, %v1277_v1  ;;  %v358_v11 = vmul.f32 %v1301_v5, %v1277_v1  ;;  %v1336_v34 = vld [vmem:[%s1657_s28 + $0x38] sm:$0xff]   ;;  %v1428_v44 = vld [vmem:[%s2182_s0 + $0x30] sm:$0xff]   ;;  %v405_v48 = vld [vmem:[%s2185_s3] sm:$0x3]  ;;  %s2131_s8 = scalar_lea.vmem %s2188_s6, %s1684_s16 }
   0xf   : > { %v359_v15 = vmul.f32 %v1304_v13, %v1277_v1  ;;  %v360_v16 = vmul.f32 %v1305_v14, %v1277_v1  ;;  %v367_v20 = vmul.f32 %v1320_v17, %v1277_v1  ;;  %v368_v21 = vmul.f32 %v1321_v18, %v1277_v1  ;;  %v1425_v41 = vld [vmem:[%s2182_s0 + $0x78] sm:$0xff]   ;;  %v449_v50 = vld [vmem:[%s1690_s19] sm:$0xff]  ;;  %v1698_v52 = vld [vmem:[%s1690_s19 + $0x8] sm:$0xff] }
  0x10   : > { %v365_v9 = vmul.f32 %v1316_v4, %v1277_v1  ;;  %373 = vadd.xlane.f32.xlu0 %v357_v8  ;;  %v366_v12 = vmul.f32 %v1317_v6, %v1277_v1  ;;  %v361_v25 = vmul.f32 %v1308_v22, %v1277_v1  ;;  %v362_v26 = vmul.f32 %v1309_v23, %v1277_v1  ;;  %v1426_v42 = vld [vmem:[%s2182_s0 + $0x38] sm:$0xff]   ;;  %v457_v51 = vld [vmem:[%s1690_s19 + $0x40] sm:$0xff]  ;;  %v1701_v53 = vld [vmem:[%s1690_s19 + $0x48] sm:$0xff] }
  0x11   : > { %v1324_v27 = vunpack.c.l.bf16 %v1335_v24  ;;  %v1325_v28 = vunpack.c.h.bf16 %v1335_v24  ;;  %v1312_v32 = vunpack.c.l.bf16 %v1332_v29  ;;  %v1313_v33 = vunpack.c.h.bf16 %v1332_v29  ;;  %1337 = vmatprep.subr.bf16.mxu0 %v1425_v41  ;;  %1401 = vmatprep.subr.bf16.mxu1 %v1425_v41  ;;  %v1706_v55 = vld [vmem:[%s1690_s19 + $0x10] sm:$0xff]  ;;  %v1709_v56 = vld [vmem:[%s1690_s19 + $0x18] sm:$0xff]  ;;  %v1723_v3 = vld [vmem:[%s1690_s19 + $0x20] sm:$0xff] }
  0x12   : > { %389 = vadd.xlane.f32.xlu1 %v365_v9  ;;  %v1328_v37 = vunpack.c.l.bf16 %v1336_v34  ;;  %v1329_v38 = vunpack.c.h.bf16 %v1336_v34  ;;  %1338 = vmatpush3.bf16.msra.mxu0 %v1426_v42  ;;  %v408_v46 = vshrl.u32 %v407_v45, 7  ;;  %v465_v58 = vunpack.c.l.bf16 %v449_v50  ;;  %v1714_v61 = vld [vmem:[%s1690_s19 + $0x50] sm:$0xff]  ;;  %v1717_v62 = vld [vmem:[%s1690_s19 + $0x58] sm:$0xff]  ;;  %v1726_v4 = vld [vmem:[%s1690_s19 + $0x28] sm:$0xff] }
  0x13   : > { %v369_v30 = vmul.f32 %v1324_v27, %v1277_v1  ;;  %v370_v31 = vmul.f32 %v1325_v28, %v1277_v1  ;;  %v363_v35 = vmul.f32 %v1312_v32, %v1277_v1  ;;  %v364_v36 = vmul.f32 %v1313_v33, %v1277_v1  ;;  %1409 = vmatpush3.bf16.msra.mxu1 %v1426_v42  ;;  %v1733_v9 = vld [vmem:[%s1690_s19 + $0x60] sm:$0xff]  ;;  %v1736_v10 = vld [vmem:[%s1690_s19 + $0x68] sm:$0xff]  ;;  %v1747_v19 = vld [vmem:[%s1690_s19 + $0x30] sm:$0xff] }
  0x14   : > { %375 = vadd.xlane.f32.xlu0 %v358_v11  ;;  %v371_v39 = vmul.f32 %v1328_v37, %v1277_v1  ;;  %v372_v40 = vmul.f32 %v1329_v38, %v1277_v1  ;;  %1339 = vmatprep.subr.bf16.mxu0 %v1427_v43  ;;  %v409_v47 = vsub.s32 0, %v408_v46  ;;  %v413_v49 = vsub.s32 1, %v408_v46  ;;  %v1764_v32 = vld [vmem:[%s1690_s19 + $0x78] sm:$0xff] }
  0x15   : > { %1402 = vmatprep.subr.bf16.mxu1 %v1427_v43  ;;  %v466_v59 = vunpack.c.h.bf16 %v449_v50  ;;  %v481_v60 = vunpack.c.l.bf16 %v457_v51  ;;  %v482_v63 = vunpack.c.h.bf16 %v457_v51  ;;  %v467_v0 = vunpack.c.l.bf16 %v1698_v52 }
  0x16   : > { %391 = vadd.xlane.f32.xlu1 %v366_v12  ;;  %1340 = vmatpush3.bf16.msra.mxu0 %v1428_v44  ;;  %v1703_v54 = vrot.slane %v405_v48, %v409_v47  ;;  %v1711_v57 = vrot.slane %v405_v48, %v413_v49  ;;  %v468_v1 = vunpack.c.h.bf16 %v1698_v52  ;;  %v483_v2 = vunpack.c.l.bf16 %v1701_v53 }
  0x17   : > { %1410 = vmatpush3.bf16.msra.mxu1 %v1428_v44  ;;  %v484_v5 = vunpack.c.h.bf16 %v1701_v53  ;;  %v469_v6 = vunpack.c.l.bf16 %v1706_v55  ;;  %v470_v7 = vunpack.c.h.bf16 %v1706_v55  ;;  %v471_v8 = vunpack.c.l.bf16 %v1709_v56 }
  0x18   : > { %377 = vadd.xlane.f32.xlu0 %v359_v15  ;;  %v472_v11 = vunpack.c.h.bf16 %v1709_v56  ;;  %v485_v12 = vunpack.c.l.bf16 %v1714_v61  ;;  %v486_v13 = vunpack.c.h.bf16 %v1714_v61  ;;  %v487_v14 = vunpack.c.l.bf16 %v1717_v62 }
  0x19   : > { %v488_v15 = vunpack.c.h.bf16 %v1717_v62  ;;  %v474_v17 = vunpack.c.h.bf16 %v1723_v3  ;;  %v475_v18 = vunpack.c.l.bf16 %v1726_v4  ;;  %v476_v23 = vunpack.c.h.bf16 %v1726_v4 }
  0x1a   : > { %379 = vadd.xlane.f32.xlu1 %v360_v16  ;;  %v473_v16 = vunpack.c.l.bf16 %v1723_v3  ;;  %v489_v24 = vunpack.c.l.bf16 %v1733_v9  ;;  %v492_v33 = vunpack.c.h.bf16 %v1736_v10  ;;  %v477_v34 = vunpack.c.l.bf16 %v1747_v19 }
  0x1c   : > { %393 = vadd.xlane.f32.xlu0 %v367_v20  ;;  %v1750_v20 = vld [vmem:[%s1690_s19 + $0x38] sm:$0xff] }
  0x1e   : > { %395 = vadd.xlane.f32.xlu1 %v368_v21 }
  0x20   : > { %381 = vadd.xlane.f32.xlu0 %v361_v25  ;;  %v490_v25 = vunpack.c.h.bf16 %v1733_v9 }
  0x22   : > { %383 = vadd.xlane.f32.xlu1 %v362_v26  ;;  %v491_v26 = vunpack.c.l.bf16 %v1736_v10 }
  0x24   : > { %397 = vadd.xlane.f32.xlu0 %v369_v30 }
  0x26   : > { %399 = vadd.xlane.f32.xlu1 %v370_v31  ;;  %v1761_v31 = vld [vmem:[%s1690_s19 + $0x70] sm:$0xff] }
  0x27   : > { %v493_v44 = vunpack.c.l.bf16 %v1761_v31 }
  0x28   : > { %385 = vadd.xlane.f32.xlu0 %v363_v35  ;;  %v478_v35 = vunpack.c.h.bf16 %v1747_v19 }
  0x2a   : > { %387 = vadd.xlane.f32.xlu1 %v364_v36  ;;  %v479_v36 = vunpack.c.l.bf16 %v1750_v20 }
  0x2c   : > { %401 = vadd.xlane.f32.xlu0 %v371_v39 }
  0x2e   : > { %403 = vadd.xlane.f32.xlu1 %v372_v40  ;;  %v480_v40 = vunpack.c.h.bf16 %v1750_v20 }
  0x99   : > { %v374_v21 = vpop.xlane.xlu0 %373 }
  0x9a   : > { %v417_v27 = vadd.f32 %v1703_v54, %v374_v21  ;;  %v418_v28 = vadd.f32 %v1711_v57, %v374_v21 }
  0x9b   : > { %v390_v22 = vpop.xlane.xlu1 %389 }
  0x9c   : > { %v433_v29 = vadd.f32 %v1703_v54, %v390_v22  ;;  %v434_v30 = vadd.f32 %v1711_v57, %v390_v22  ;;  %v497_v37 = vadd.f32 %v465_v58, %v417_v27  ;;  %v498_v38 = vadd.f32 %v466_v59, %v418_v28 }
  0x9d   : > { %v376_v42 = vpop.xlane.xlu0 %375  ;;  %v496_v58 = vunpack.c.h.bf16 %v1764_v32 }
  0x9e   : > { %v513_v39 = vadd.f32 %v481_v60, %v433_v29  ;;  %v514_v41 = vadd.f32 %v482_v63, %v434_v30  ;;  %v419_v47 = vadd.f32 %v1703_v54, %v376_v42  ;;  %v420_v48 = vadd.f32 %v1711_v57, %v376_v42 }
  0x9f   : > { %v392_v43 = vpop.xlane.xlu1 %391  ;;  %v529_v51 = vmul.f32 0.2, %v497_v37  ;;  %v530_v52 = vmul.f32 0.2, %v498_v38 }
  0xa0   : > { %v435_v49 = vadd.f32 %v1703_v54, %v392_v43  ;;  %v436_v50 = vadd.f32 %v1711_v57, %v392_v43  ;;  %v545_v53 = vmul.f32 0.2, %v513_v39  ;;  %v499_v59 = vadd.f32 %v467_v0, %v419_v47 }
  0xa1   : > { %v500_v60 = vadd.f32 %v468_v1, %v420_v48  ;;  %v378_v22 = vpop.xlane.xlu0 %377  ;;  %v1779_v28 = vmax.f32 %v497_v37, %v529_v51  ;;  %v1781_v29 = vmax.f32 %v498_v38, %v530_v52  ;;  %v546_v30 = vmul.f32 0.2, %v514_v41 }
  0xa2   : > { %v515_v63 = vadd.f32 %v483_v2, %v435_v49  ;;  %v516_v21 = vadd.f32 %v484_v5, %v436_v50  ;;  %v1783_v42 = vmax.f32 %v513_v39, %v545_v53  ;;  %v421_v43 = vadd.f32 %v1703_v54, %v378_v22 }
  0xa3   : > { %v380_v27 = vpop.xlane.xlu1 %379  ;;  %v422_v46 = vadd.f32 %v1711_v57, %v378_v22  ;;  %v593_v1 = vmax.f32 %v1779_v28, %v1781_v29  ;;  %v531_v2 = vmul.f32 0.2, %v499_v59  ;;  %v532_v5 = vmul.f32 0.2, %v500_v60 }
  0xa4   : > { %v423_v45 = vadd.f32 %v1703_v54, %v380_v27  ;;  %v424_v0 = vadd.f32 %v1711_v57, %v380_v27  ;;  %v1791_v37 = vmax.f32 %v514_v41, %v546_v30  ;;  %v501_v38 = vadd.f32 %v469_v6, %v421_v43 }
  0xa5   : > { %v502_v39 = vadd.f32 %v470_v7, %v422_v46  ;;  %594 = vmax.xlane.f32.xlu0 %v593_v1  ;;  %v394_v49 = vpop.xlane.xlu0 %393  ;;  %v1801_v51 = vmax.f32 %v499_v59, %v531_v2  ;;  %v1803_v52 = vmax.f32 %v500_v60, %v532_v5  ;;  %v547_v6 = vmul.f32 0.2, %v515_v63 }
  0xa6   : > { %v503_v47 = vadd.f32 %v471_v8, %v423_v45  ;;  %v504_v48 = vadd.f32 %v472_v11, %v424_v0  ;;  %v617_v41 = vmax.f32 %v1783_v42, %v1791_v37  ;;  %v437_v55 = vadd.f32 %v1703_v54, %v394_v49 }
  0xa7   : > { %v396_v50 = vpop.xlane.xlu1 %395  ;;  %v438_v7 = vadd.f32 %v1711_v57, %v394_v49  ;;  %v596_v11 = vmax.f32 %v1801_v51, %v1803_v52  ;;  %v548_v45 = vmul.f32 0.2, %v516_v21  ;;  %v1813_v46 = vmax.f32 %v515_v63, %v547_v6 }
  0xa8   : > { %v439_v8 = vadd.f32 %v1703_v54, %v396_v50  ;;  %v440_v56 = vadd.f32 %v1711_v57, %v396_v50  ;;  %v533_v53 = vmul.f32 0.2, %v501_v38  ;;  %v517_v59 = vadd.f32 %v485_v12, %v437_v55 }
  0xa9   : > { %v518_v60 = vadd.f32 %v486_v13, %v438_v7  ;;  %597 = vmax.xlane.f32.xlu1 %v596_v11  ;;  %618 = vmax.xlane.f32.xlu0 %v617_v41  ;;  %v382_v30 = vpop.xlane.xlu0 %381  ;;  %v1823_v0 = vmax.f32 %v516_v21, %v548_v45  ;;  %v534_v63 = vmul.f32 0.2, %v502_v39  ;;  %v535_v2 = vmul.f32 0.2, %v503_v47 }
  0xaa   : > { %v519_v22 = vadd.f32 %v487_v14, %v439_v8  ;;  %v520_v27 = vadd.f32 %v488_v15, %v440_v56  ;;  %v1825_v1 = vmax.f32 %v501_v38, %v533_v53  ;;  %v425_v12 = vadd.f32 %v1703_v54, %v382_v30 }
  0xab   : > { %v384_v43 = vpop.xlane.xlu1 %383  ;;  %v426_v61 = vadd.f32 %v1711_v57, %v382_v30  ;;  %v620_v62 = vmax.f32 %v1813_v46, %v1823_v0  ;;  %v1833_v15 = vmax.f32 %v502_v39, %v534_v63  ;;  %v536_v5 = vmul.f32 0.2, %v504_v48 }
  0xac   : > { %v427_v13 = vadd.f32 %v1703_v54, %v384_v43  ;;  %v428_v14 = vadd.f32 %v1711_v57, %v384_v43  ;;  %v1835_v21 = vmax.f32 %v503_v47, %v535_v2  ;;  %v505_v38 = vadd.f32 %v473_v16, %v425_v12 }
  0xad   : > { %v506_v49 = vadd.f32 %v474_v17, %v426_v61  ;;  %621 = vmax.xlane.f32.xlu1 %v620_v62  ;;  %v599_v39 = vmax.f32 %v1825_v1, %v1833_v15  ;;  %v398_v6 = vpop.xlane.xlu0 %397  ;;  %v1847_v47 = vmax.f32 %v504_v48, %v536_v5  ;;  %v549_v7 = vmul.f32 0.2, %v517_v59 }
  0xae   : > { %v507_v50 = vadd.f32 %v475_v18, %v427_v13  ;;  %v508_v41 = vadd.f32 %v476_v23, %v428_v14  ;;  %v550_v8 = vmul.f32 0.2, %v518_v60  ;;  %v441_v16 = vadd.f32 %v1703_v54, %v398_v6 }
  0xaf   : > { %v400_v55 = vpop.xlane.xlu1 %399  ;;  %v442_v3 = vadd.f32 %v1711_v57, %v398_v6  ;;  %600 = vmax.xlane.f32.xlu0 %v599_v39  ;;  %v602_v4 = vmax.f32 %v1835_v21, %v1847_v47  ;;  %v1855_v23 = vmax.f32 %v517_v59, %v549_v7  ;;  %v551_v48 = vmul.f32 0.2, %v519_v22 }
  0xb0   : > { %v443_v17 = vadd.f32 %v1703_v54, %v400_v55  ;;  %v444_v18 = vadd.f32 %v1711_v57, %v400_v55  ;;  %v1857_v56 = vmax.f32 %v518_v60, %v550_v8  ;;  %v521_v11 = vadd.f32 %v489_v24, %v441_v16 }
  0xb1   : > { %v522_v45 = vadd.f32 %v490_v25, %v442_v3  ;;  %603 = vmax.xlane.f32.xlu1 %v602_v4  ;;  %v386_v60 = vpop.xlane.xlu0 %385  ;;  %v552_v63 = vmul.f32 0.2, %v520_v27  ;;  %v1871_v2 = vmax.f32 %v519_v22, %v551_v48  ;;  %v537_v24 = vmul.f32 0.2, %v505_v38  ;;  %v1429_v22 = vld [vmem:[%s2182_s0 + $0x68] sm:$0xff]   ;;  %v1431_v3 = vld [vmem:[%s2182_s0 + $0x60] sm:$0xff]  }
  0xb2   : > { %v523_v53 = vadd.f32 %v491_v26, %v443_v17  ;;  %v1867_v30 = vadd.f32 %v492_v33, %v444_v18  ;;  %v623_v59 = vmax.f32 %v1855_v23, %v1857_v56  ;;  %v429_v9 = vadd.f32 %v1703_v54, %v386_v60  ;;  %1341 = vmatprep.subr.bf16.mxu0 %v1429_v22 }
  0xb3   : > { %v388_v43 = vpop.xlane.xlu1 %387  ;;  %v430_v25 = vadd.f32 %v1711_v57, %v386_v60  ;;  %v1877_v33 = vmax.f32 %v520_v27, %v552_v63  ;;  %v538_v12 = vmul.f32 0.2, %v506_v49  ;;  %v1879_v61 = vmax.f32 %v505_v38, %v537_v24  ;;  %v1430_v38 = vld [vmem:[%s2182_s0 + $0x28] sm:$0xff]   ;;  %1403 = vmatprep.subr.bf16.mxu1 %v1429_v22 }
  0xb4   : > { %v431_v26 = vadd.f32 %v1703_v54, %v388_v43  ;;  %v432_v10 = vadd.f32 %v1711_v57, %v388_v43  ;;  %624 = vmax.xlane.f32.xlu0 %v623_v59  ;;  %v539_v13 = vmul.f32 0.2, %v507_v50  ;;  %v509_v14 = vadd.f32 %v477_v34, %v429_v9  ;;  %1342 = vmatpush3.bf16.msra.mxu0 %v1430_v38 }
  0xb5   : > { %v510_v62 = vadd.f32 %v478_v35, %v430_v25  ;;  %v626_v39 = vmax.f32 %v1871_v2, %v1877_v33  ;;  %v1897_v6 = vmax.f32 %v506_v49, %v538_v12  ;;  %v402_v55 = vpop.xlane.xlu0 %401  ;;  %v540_v7 = vmul.f32 0.2, %v508_v41  ;;  %1411 = vmatpush3.bf16.msra.mxu1 %v1430_v38  ;;  %1343 = vmatprep.subr.bf16.mxu0 %v1431_v3 }
  0xb6   : > { %v511_v5 = vadd.f32 %v479_v36, %v431_v26  ;;  %v512_v27 = vadd.f32 %v480_v40, %v432_v10  ;;  %v1899_v19 = vmax.f32 %v507_v50, %v539_v13  ;;  %v445_v35 = vadd.f32 %v1703_v54, %v402_v55  ;;  %1404 = vmatprep.subr.bf16.mxu1 %v1431_v3  ;;  %v1433_v26 = vld [vmem:[%s2182_s0 + $0x58] sm:$0xff]   ;;  %v1440_v3 = vld [vmem:[%s2182_s0] sm:$0xff]  }
  0xb7   : > { %v404_v34 = vpop.xlane.xlu1 %403  ;;  %v446_v20 = vadd.f32 %v1711_v57, %v402_v55  ;;  %627 = vmax.xlane.f32.xlu1 %v626_v39  ;;  %v605_v49 = vmax.f32 %v1879_v61, %v1897_v6  ;;  %v1907_v8 = vmax.f32 %v508_v41, %v540_v7  ;;  %v553_v16 = vmul.f32 0.2, %v521_v11  ;;  %v1432_v41 = vld [vmem:[%s2182_s0 + $0x20] sm:$0xff]  }
  0xb8   : > { %v447_v36 = vadd.f32 %v1703_v54, %v404_v34  ;;  %v448_v40 = vadd.f32 %v1711_v57, %v404_v34  ;;  %v554_v50 = vmul.f32 0.2, %v522_v45  ;;  %v525_v17 = vadd.f32 %v493_v44, %v445_v35  ;;  %1344 = vmatpush3.bf16.msra.mxu0 %v1432_v41 }
  0xb9   : > { %v2189_v54 = vunpack.c.h.bf16 %v1761_v31  ;;  %v2190_v18 = vunpack.c.l.bf16 %v1764_v32  ;;  %606 = vmax.xlane.f32.xlu0 %v605_v49  ;;  %v608_v48 = vmax.f32 %v1899_v19, %v1907_v8  ;;  %v1923_v59 = vmax.f32 %v521_v11, %v553_v16  ;;  %1412 = vmatpush3.bf16.msra.mxu1 %v1432_v41  ;;  %v1438_v49 = vld [vmem:[%s2182_s0 + $0x8] sm:$0xff]  }
  0xba   : > { %v1925_v60 = vmax.f32 %v522_v45, %v554_v50  ;;  %v555_v43 = vmul.f32 0.2, %v523_v53  ;;  %v528_v31 = vadd.f32 %v496_v58, %v448_v40  ;;  %v556_v44 = vmul.f32 0.2, %v1867_v30  ;;  %1345 = vmatprep.subr.bf16.mxu0 %v1433_v26  ;;  %1405 = vmatprep.subr.bf16.mxu1 %v1433_v26  ;;  %v1437_v40 = vld [vmem:[%s2182_s0 + $0x48] sm:$0xff]   ;;  %v1439_v50 = vld [vmem:[%s2182_s0 + $0x40] sm:$0xff]  }
  0xbb   : > { %v526_v57 = vadd.f32 %v2189_v54, %v446_v20  ;;  %v527_v4 = vadd.f32 %v2190_v18, %v447_v36  ;;  %v541_v63 = vmul.f32 0.2, %v509_v14  ;;  %v542_v24 = vmul.f32 0.2, %v510_v62  ;;  %609 = vmax.xlane.f32.xlu1 %v608_v48 }
  0xbc   : > { %v629_v9 = vmax.f32 %v1923_v59, %v1925_v60  ;;  %v1932_v25 = vmax.f32 %v523_v53, %v555_v43  ;;  %v543_v11 = vmul.f32 0.2, %v511_v5  ;;  %v544_v45 = vmul.f32 0.2, %v512_v27  ;;  %v1434_v53 = vld [vmem:[%s2182_s0 + $0x18] sm:$0xff]  }
  0xbd   : > { %v1938_v32 = vmax.f32 %v1867_v30, %v556_v44  ;;  %v1940_v58 = vmax.f32 %v509_v14, %v541_v63  ;;  %v1942_v10 = vmax.f32 %v510_v62, %v542_v24  ;;  %v557_v12 = vmul.f32 0.2, %v525_v17  ;;  %1346 = vmatpush3.bf16.msra.mxu0 %v1434_v53  ;;  %1413 = vmatpush3.bf16.msra.mxu1 %v1434_v53 }
  0xbe   : > { %630 = vmax.xlane.f32.xlu0 %v629_v9  ;;  %v1947_v13 = vmax.f32 %v511_v5, %v543_v11  ;;  %v1949_v22 = vmax.f32 %v512_v27, %v544_v45  ;;  %v558_v38 = vmul.f32 0.2, %v526_v57  ;;  %v559_v39 = vmul.f32 0.2, %v527_v4  ;;  %v1435_v5 = vld [vmem:[%s2182_s0 + $0x50] sm:$0xff]  }
  0xbf   : > { %v632_v30 = vmax.f32 %v1932_v25, %v1938_v32  ;;  %v611_v14 = vmax.f32 %v1940_v58, %v1942_v10  ;;  %v1955_v62 = vmax.f32 %v525_v17, %v557_v12  ;;  %v560_v55 = vmul.f32 0.2, %v528_v31  ;;  %v1436_v27 = vld [vmem:[%s2182_s0 + $0x10] sm:$0xff]   ;;  %1347 = vmatprep.subr.bf16.mxu0 %v1435_v5  ;;  %1406 = vmatprep.subr.bf16.mxu1 %v1435_v5 }
  0xc0   : > { %v1957_v34 = vmax.f32 %v526_v57, %v558_v38  ;;  %v614_v35 = vmax.f32 %v1947_v13, %v1949_v22  ;;  %v1969_v20 = vmax.f32 %v527_v4, %v559_v39 }
  0xc1   : > { %633 = vmax.xlane.f32.xlu1 %v632_v30  ;;  %v1971_v36 = vmax.f32 %v528_v31, %v560_v55  ;;  %1348 = vmatpush3.bf16.msra.mxu0 %v1436_v27 }
  0xc2   : > { %612 = vmax.xlane.f32.xlu0 %v611_v14  ;;  %v635_v7 = vmax.f32 %v1955_v62, %v1957_v34  ;;  %1414 = vmatpush3.bf16.msra.mxu1 %v1436_v27 }
  0xc3   : > { %1349 = vmatprep.subr.bf16.mxu0 %v1437_v40  ;;  %v638_v16 = vmax.f32 %v1969_v20, %v1971_v36  ;;  %1407 = vmatprep.subr.bf16.mxu1 %v1437_v40 }
  0xc5   : > { %615 = vmax.xlane.f32.xlu1 %v614_v35  ;;  %1350 = vmatpush3.bf16.msra.mxu0 %v1438_v49 }
  0xc6   : > { %636 = vmax.xlane.f32.xlu0 %v635_v7  ;;  %1415 = vmatpush3.bf16.msra.mxu1 %v1438_v49 }
  0xc7   : > { %1351 = vmatprep.subr.bf16.mxu0 %v1439_v50  ;;  %1408 = vmatprep.subr.bf16.mxu1 %v1439_v50 }
  0xc9   : > { %639 = vmax.xlane.f32.xlu1 %v638_v16  ;;  %1352 = vmatpush3.bf16.msra.mxu0 %v1440_v3 }
  0xca   : > { %1416 = vmatpush3.bf16.msra.mxu1 %v1440_v3 }
 0x12e   : > { %v595_v17 = vpop.xlane.xlu0 %594 }
 0x12f   : > { %v641_v54 = vsub.f32 %v1779_v28, %v595_v17  ;;  %v642_v57 = vsub.f32 %v1781_v29, %v595_v17 }
 0x131   : > { %v673_v18 = vmul.f32 1.442695, %v641_v54  ;;  %v675_v4 = vmul.f32 1.442695, %v642_v57 }
 0x132   : > { %v598_v41 = vpop.xlane.xlu1 %597  ;;  %v619_v48 = vpop.xlane.xlu0 %618 }
 0x133   : > { %1441 = vpow2.f32 %v673_v18  ;;  %v643_v43 = vsub.f32 %v1801_v51, %v598_v41  ;;  %v644_v31 = vsub.f32 %v1803_v52, %v598_v41  ;;  %v657_v44 = vsub.f32 %v1783_v42, %v619_v48 }
 0x134   : > { %1443 = vpow2.f32 %v675_v4  ;;  %v658_v63 = vsub.f32 %v1791_v37, %v619_v48 }
 0x135   : > { %v677_v24 = vmul.f32 1.442695, %v643_v43  ;;  %v679_v9 = vmul.f32 1.442695, %v644_v31  ;;  %v705_v11 = vmul.f32 1.442695, %v657_v44 }
 0x136   : > { %v707_v28 = vmul.f32 1.442695, %v658_v63  ;;  %v622_v45 = vpop.xlane.xlu1 %621 }
 0x137   : > { %1445 = vpow2.f32 %v677_v24  ;;  %v659_v29 = vsub.f32 %v1813_v46, %v622_v45  ;;  %v660_v26 = vsub.f32 %v1823_v0, %v622_v45 }
 0x138   : > { %1447 = vpow2.f32 %v679_v9  ;;  %v601_v12 = vpop.xlane.xlu0 %600 }
 0x139   : > { %1449 = vpow2.f32 %v705_v11  ;;  %v709_v51 = vmul.f32 1.442695, %v659_v29  ;;  %v711_v52 = vmul.f32 1.442695, %v660_v26  ;;  %v645_v42 = vsub.f32 %v1825_v1, %v601_v12 }
 0x13a   : > { %1451 = vpow2.f32 %v707_v28  ;;  %v646_v37 = vsub.f32 %v1833_v15, %v601_v12  ;;  %v604_v53 = vpop.xlane.xlu1 %603 }
 0x13b   : > { %1453 = vpow2.f32 %v709_v51  ;;  %v681_v38 = vmul.f32 1.442695, %v645_v42  ;;  %v647_v39 = vsub.f32 %v1835_v21, %v604_v53  ;;  %v648_v30 = vsub.f32 %v1847_v47, %v604_v53 }
 0x13c   : > { %1455 = vpow2.f32 %v711_v52  ;;  %v683_v46 = vmul.f32 1.442695, %v646_v37 }
 0x13d   : > { %v625_v0 = vpop.xlane.xlu0 %624  ;;  %1457 = vpow2.f32 %v681_v38  ;;  %v685_v14 = vmul.f32 1.442695, %v647_v39  ;;  %v687_v55 = vmul.f32 1.442695, %v648_v30 }
 0x13e   : > { %v661_v5 = vsub.f32 %v1855_v23, %v625_v0  ;;  %1459 = vpow2.f32 %v683_v46  ;;  %v662_v1 = vsub.f32 %v1857_v56, %v625_v0 }
 0x13f   : > { %1461 = vpow2.f32 %v685_v14 }
 0x140   : > { %v713_v15 = vmul.f32 1.442695, %v661_v5  ;;  %v1442_v27 = vpop.eup %1441  ;;  %1463 = vpow2.f32 %v687_v55  ;;  %v715_v7 = vmul.f32 1.442695, %v662_v1  ;;  %v628_v35 = vpop.xlane.xlu1 %627 }
 0x141   : > { %v1444_v21 = vpop.eup %1443  ;;  %v663_v47 = vsub.f32 %v1871_v2, %v628_v35  ;;  %v664_v40 = vsub.f32 %v1877_v33, %v628_v35 }
 0x142   : > { %1465 = vpow2.f32 %v713_v15  ;;  %v607_v49 = vpop.xlane.xlu0 %606  ;;  %v737_v16 = vadd.f32 %v1444_v21, %v1442_v27 }
 0x143   : > { %v717_v50 = vmul.f32 1.442695, %v663_v47  ;;  %v719_v3 = vmul.f32 1.442695, %v664_v40  ;;  %v649_v23 = vsub.f32 %v1879_v61, %v607_v49  ;;  %v650_v56 = vsub.f32 %v1897_v6, %v607_v49 }
 0x144   : > { %v1446_v17 = vpop.eup %1445  ;;  %1467 = vpow2.f32 %v715_v7  ;;  %v610_v54 = vpop.xlane.xlu1 %609  ;;  %738 = vadd.xlane.f32.xlu0 %v737_v16 }
 0x145   : > { %v1448_v57 = vpop.eup %1447  ;;  %1469 = vpow2.f32 %v717_v50  ;;  %v689_v18 = vmul.f32 1.442695, %v649_v23  ;;  %v691_v4 = vmul.f32 1.442695, %v650_v56  ;;  %v651_v2 = vsub.f32 %v1899_v19, %v610_v54 }
 0x146   : > { %v2006_v33 = vpop.eup %1449  ;;  %1471 = vpow2.f32 %v719_v3  ;;  %v652_v41 = vsub.f32 %v1907_v8, %v610_v54  ;;  %v740_v43 = vadd.f32 %v1448_v57, %v1446_v17  ;;  %v786_v61 = vpack.c.bf16 %v1448_v57, %v1444_v21 }
 0x147   : > { %v631_v48 = vpop.xlane.xlu0 %630  ;;  %v2009_v31 = vpop.eup %1451  ;;  %1473 = vpow2.f32 %v689_v18  ;;  %v693_v6 = vmul.f32 1.442695, %v651_v2  ;;  %v785_v9 = vpack.c.bf16 %v1446_v17, %v1442_v27 }
 0x148   : > { %v665_v44 = vsub.f32 %v1923_v59, %v631_v48  ;;  %v666_v63 = vsub.f32 %v1925_v60, %v631_v48  ;;  %v2013_v24 = vpop.eup %1453  ;;  %1475 = vpow2.f32 %v691_v4  ;;  %v695_v19 = vmul.f32 1.442695, %v652_v41  ;;  %741 = vadd.xlane.f32.xlu1 %v740_v43  ;;  %929 = vmatprep.mubr.bf16.mxu0 %v786_v61 }
 0x149   : > { %v2015_v11 = vpop.eup %1455  ;;  %1477 = vpow2.f32 %v693_v6  ;;  %v793_v29 = vpack.c.bf16 %v2013_v24, %v2006_v33  ;;  %930 = vmatmul.mubr.bf16.vlgmr.msra.gmra.mxu0 %v785_v9 }
 0x14a   : > { %v721_v8 = vmul.f32 1.442695, %v665_v44  ;;  %v723_v28 = vmul.f32 1.442695, %v666_v63  ;;  %v634_v45 = vpop.xlane.xlu1 %633  ;;  %v1458_v26 = vpop.eup %1457  ;;  %1479 = vpow2.f32 %v695_v19  ;;  %v794_v51 = vpack.c.bf16 %v2015_v11, %v2009_v31 }
 0x14b   : > { %v667_v59 = vsub.f32 %v1932_v25, %v634_v45  ;;  %v668_v60 = vsub.f32 %v1938_v32, %v634_v45  ;;  %v613_v12 = vpop.xlane.xlu0 %612  ;;  %v1460_v52 = vpop.eup %1459 }
 0x14c   : > { %v653_v42 = vsub.f32 %v1940_v58, %v613_v12  ;;  %v654_v37 = vsub.f32 %v1942_v10, %v613_v12  ;;  %v1462_v53 = vpop.eup %1461  ;;  %1481 = vpow2.f32 %v721_v8  ;;  %961 = vmatprep.mubr.bf16.mxu1 %v794_v51  ;;  %v743_v30 = vadd.f32 %v1460_v52, %v1458_v26 }
 0x14d   : > { %v725_v38 = vmul.f32 1.442695, %v667_v59  ;;  %v727_v39 = vmul.f32 1.442695, %v668_v60  ;;  %v1464_v46 = vpop.eup %1463  ;;  %1483 = vpow2.f32 %v723_v28  ;;  %962 = vmatmul.mubr.bf16.vlgmr.msra.gmra.mxu1 %v793_v29  ;;  %v787_v14 = vpack.c.bf16 %v1462_v53, %v1458_v26 }
 0x14e   : > { %v697_v25 = vmul.f32 1.442695, %v653_v42  ;;  %v699_v32 = vmul.f32 1.442695, %v654_v37  ;;  %v616_v0 = vpop.xlane.xlu1 %615  ;;  %744 = vadd.xlane.f32.xlu0 %v743_v30  ;;  %v746_v10 = vadd.f32 %v1464_v46, %v1462_v53  ;;  %v788_v7 = vpack.c.bf16 %v1464_v46, %v1460_v52 }
 0x14f   : > { %1485 = vpow2.f32 %v725_v38  ;;  %v655_v55 = vsub.f32 %v1947_v13, %v616_v0  ;;  %v656_v58 = vsub.f32 %v1949_v22, %v616_v0  ;;  %v637_v5 = vpop.xlane.xlu0 %636  ;;  %v2027_v1 = vpop.eup %1465  ;;  %v761_v51 = vadd.f32 %v2009_v31, %v2006_v33 }
 0x150   : > { %1487 = vpow2.f32 %v727_v39  ;;  %v669_v15 = vsub.f32 %v1955_v62, %v637_v5  ;;  %v670_v27 = vsub.f32 %v1957_v34, %v637_v5  ;;  %747 = vadd.xlane.f32.xlu1 %v746_v10  ;;  %937 = vmatprep.mubr.bf16.mxu0 %v788_v7  ;;  %v764_v37 = vadd.f32 %v2015_v11, %v2013_v24 }
 0x151   : > { %1489 = vpow2.f32 %v697_v25  ;;  %v701_v35 = vmul.f32 1.442695, %v655_v55  ;;  %v703_v21 = vmul.f32 1.442695, %v656_v58  ;;  %v2031_v47 = vpop.eup %1467  ;;  %938 = vmatmul.mubr.bf16.gmra.mxu0 %v787_v14 }
 0x152   : > { %1491 = vpow2.f32 %v699_v32  ;;  %v729_v13 = vmul.f32 1.442695, %v669_v15  ;;  %v731_v22 = vmul.f32 1.442695, %v670_v27  ;;  %v640_v40 = vpop.xlane.xlu1 %639  ;;  %v2033_v49 = vpop.eup %1469  ;;  %v767_v38 = vadd.f32 %v2031_v47, %v2027_v1 }
 0x153   : > { %1493 = vpow2.f32 %v701_v35  ;;  %v671_v16 = vsub.f32 %v1969_v20, %v640_v40  ;;  %v672_v62 = vsub.f32 %v1971_v36, %v640_v40  ;;  %v1472_v34 = vpop.eup %1471  ;;  %v795_v50 = vpack.c.bf16 %v2033_v49, %v2027_v1 }
 0x154   : > { %1495 = vpow2.f32 %v703_v21  ;;  %v1474_v3 = vpop.eup %1473  ;;  %v796_v17 = vpack.c.bf16 %v1472_v34, %v2031_v47  ;;  %v770_v39 = vadd.f32 %v1472_v34, %v2033_v49  ;;  %v2052_v47 = vld [vmem:[%s2187_s5] ss:$0 sm:$0xff] }
 0x155   : > { %1497 = vpow2.f32 %v729_v13  ;;  %v733_v23 = vmul.f32 1.442695, %v671_v16  ;;  %v735_v56 = vmul.f32 1.442695, %v672_v62  ;;  %v1476_v54 = vpop.eup %1475 }
 0x156   : > { %1499 = vpow2.f32 %v731_v22  ;;  %v1478_v57 = vpop.eup %1477  ;;  %969 = vmatprep.mubr.bf16.mxu1 %v796_v17  ;;  %v749_v20 = vadd.f32 %v1476_v54, %v1474_v3 }
 0x157   : > { %1501 = vpow2.f32 %v733_v23  ;;  %v1480_v18 = vpop.eup %1479  ;;  %970 = vmatmul.mubr.bf16.gmra.mxu1 %v795_v50  ;;  %v789_v36 = vpack.c.bf16 %v1478_v57, %v1474_v3 }
 0x158   : > { %1503 = vpow2.f32 %v735_v56  ;;  %750 = vadd.xlane.f32.xlu0 %v749_v20  ;;  %v752_v4 = vadd.f32 %v1480_v18, %v1478_v57  ;;  %v790_v2 = vpack.c.bf16 %v1480_v18, %v1476_v54 }
 0x159   : > { %v1482_v41 = vpop.eup %1481 }
 0x15a   : > { %v1484_v48 = vpop.eup %1483  ;;  %753 = vadd.xlane.f32.xlu1 %v752_v4  ;;  %945 = vmatprep.mubr.bf16.mxu0 %v790_v2 }
 0x15b   : > { %946 = vmatmul.mubr.bf16.gmra.mxu0 %v789_v36  ;;  %v773_v30 = vadd.f32 %v1484_v48, %v1482_v41 }
 0x15c   : > { %v1486_v43 = vpop.eup %1485 }
 0x15d   : > { %v1488_v61 = vpop.eup %1487  ;;  %v797_v6 = vpack.c.bf16 %v1486_v43, %v1482_v41 }
 0x15e   : > { %v1490_v44 = vpop.eup %1489  ;;  %v798_v63 = vpack.c.bf16 %v1488_v61, %v1484_v48  ;;  %v776_v33 = vadd.f32 %v1488_v61, %v1486_v43 }
 0x15f   : > { %v1492_v19 = vpop.eup %1491 }
 0x160   : > { %v1494_v9 = vpop.eup %1493  ;;  %977 = vmatprep.mubr.bf16.mxu1 %v798_v63  ;;  %v755_v8 = vadd.f32 %v1492_v19, %v1490_v44 }
 0x161   : > { %v1496_v28 = vpop.eup %1495  ;;  %978 = vmatmul.mubr.bf16.gmra.mxu1 %v797_v6  ;;  %v791_v45 = vpack.c.bf16 %v1494_v9, %v1490_v44 }
 0x162   : > { %v1498_v29 = vpop.eup %1497  ;;  %756 = vadd.xlane.f32.xlu0 %v755_v8  ;;  %v758_v26 = vadd.f32 %v1496_v28, %v1494_v9  ;;  %v792_v59 = vpack.c.bf16 %v1496_v28, %v1492_v19 }
 0x163   : > { %v1500_v60 = vpop.eup %1499 }
 0x164   : > { %v1502_v12 = vpop.eup %1501  ;;  %759 = vadd.xlane.f32.xlu1 %v758_v26  ;;  %953 = vmatprep.mubr.bf16.mxu0 %v792_v59  ;;  %v779_v31 = vadd.f32 %v1500_v60, %v1498_v29 }
 0x165   : > { %v1504_v52 = vpop.eup %1503  ;;  %954 = vmatmul.mubr.bf16.gmra.mxu0 %v791_v45  ;;  %v799_v42 = vpack.c.bf16 %v1502_v12, %v1498_v29 }
 0x166   : > { %762 = vadd.xlane.f32.xlu0 %v761_v51  ;;  %v800_v53 = vpack.c.bf16 %v1504_v52, %v1500_v60  ;;  %v782_v46 = vadd.f32 %v1504_v52, %v1502_v12 }
 0x168   : > { %765 = vadd.xlane.f32.xlu1 %v764_v37  ;;  %985 = vmatprep.mubr.bf16.mxu1 %v800_v53 }
 0x169   : > { %986 = vmatmul.mubr.bf16.gmra.mxu1 %v799_v42 }
 0x16a   : > { %768 = vadd.xlane.f32.xlu0 %v767_v38 }
 0x16c   : > { %771 = vadd.xlane.f32.xlu1 %v770_v39 }
 0x16e   : > { %774 = vadd.xlane.f32.xlu0 %v773_v30 }
 0x170   : > { %777 = vadd.xlane.f32.xlu1 %v776_v33 }
 0x172   : > { %780 = vadd.xlane.f32.xlu0 %v779_v31 }
 0x174   : > { %783 = vadd.xlane.f32.xlu1 %v782_v46 }
 0x1cd   : > { %v739_v24 = vpop.xlane.xlu0 %738 }
 0x1ce   : > { %1505 = vrcp.f32 %v739_v24 }
 0x1d1   : > { %v742_v11 = vpop.xlane.xlu1 %741 }
 0x1d7   : > { %v745_v25 = vpop.xlane.xlu0 %744 }
 0x1d9   : > { %v748_v32 = vpop.xlane.xlu1 %747 }
 0x1db   : > { %v1506_v21 = vpop.eup %1505 }
 0x1e1   : > { %v751_v0 = vpop.xlane.xlu0 %750 }
 0x1e3   : > { %v754_v14 = vpop.xlane.xlu1 %753 }
 0x1eb   : > { %v757_v55 = vpop.xlane.xlu0 %756 }
 0x1ed   : > { %v2047_v58 = vpop.xlane.xlu1 %759 }
 0x1ef   : > { %v763_v5 = vpop.xlane.xlu0 %762 }
 0x1f0   : > { %1507 = vrcp.f32 %v763_v5 }
 0x1f1   : > { %1509 = vrcp.f32 %v742_v11  ;;  %v766_v10 = vpop.xlane.xlu1 %765 }
 0x1f2   : > { %1511 = vrcp.f32 %v766_v10 }
 0x1f3   : > { %1513 = vrcp.f32 %v745_v25  ;;  %v769_v15 = vpop.xlane.xlu0 %768 }
 0x1f4   : > { %1515 = vrcp.f32 %v748_v32 }
 0x1f5   : > { %1517 = vrcp.f32 %v769_v15  ;;  %v772_v22 = vpop.xlane.xlu1 %771 }
 0x1f6   : > { %1519 = vrcp.f32 %v751_v0 }
 0x1f7   : > { %1521 = vrcp.f32 %v772_v22  ;;  %v775_v57 = vpop.xlane.xlu0 %774 }
 0x1f8   : > { %1523 = vrcp.f32 %v754_v14 }
 0x1f9   : > { %1525 = vrcp.f32 %v775_v57  ;;  %v778_v29 = vpop.xlane.xlu1 %777 }
 0x1fb   : > { %v781_v24 = vpop.xlane.xlu0 %780 }
 0x1fd   : > { %v1508_v34 = vpop.eup %1507  ;;  %v784_v10 = vpop.xlane.xlu1 %783 }
 0x1fe   : > { %v1510_v56 = vpop.eup %1509 }
 0x1ff   : > { %v1512_v48 = vpop.eup %1511 }
 0x200   : > { %v1514_v44 = vpop.eup %1513 }
 0x201   : > { %v1516_v37 = vpop.eup %1515 }
 0x202   : > { %v1518_v39 = vpop.eup %1517 }
 0x203   : > { %v1520_v5 = vpop.eup %1519 }
 0x209   : > { %v1353_v1 = vpop.f32.mrf.mxu0 }
 0x20b   : > { %v1354_v27 = vpop.f32.mrf.mxu0 }
 0x20c   : > { %v1355_v7 = vadd.f32 %v1354_v27, %v1353_v1 }
 0x20d   : > { %v1377_v35 = vpop.f32.mrf.mxu1  ;;  %v1356_v13 = vpop.f32.mrf.mxu0 }
 0x20e   : > { %v1010_v40 = vmul.f32 %v1506_v21, %v1355_v7  ;;  %v1522_v7 = vpop.eup %1521 }
 0x20f   : > { %v1378_v49 = vpop.f32.mrf.mxu1  ;;  %v1357_v16 = vpop.f32.mrf.mxu0 }
 0x210   : > { %v1379_v62 = vadd.f32 %v1378_v49, %v1377_v35  ;;  %v2055_v50 = vadd.f32 %v2052_v47, %v1010_v40  ;;  %v1358_v3 = vadd.f32 %v1357_v16, %v1356_v13 }
 0x211   : > { %v1380_v23 = vpop.f32.mrf.mxu1  ;;  %v1359_v54 = vpop.f32.mrf.mxu0 }
 0x212   : > { %v1018_v17 = vmul.f32 %v1508_v34, %v1379_v62  ;;  %v1049_v20 = vsub.f32 0.0, %v2055_v50  ;;  %v1011_v18 = vmul.f32 %v1510_v56, %v1358_v3  ;;  %v1524_v62 = vpop.eup %1523 }
 0x213   : > { %v1381_v36 = vpop.f32.mrf.mxu1  ;;  %v1360_v2 = vpop.f32.mrf.mxu0 }
 0x214   : > { %v2059_v4 = vadd.f32 %v2052_v47, %v1018_v17  ;;  %v1382_v41 = vadd.f32 %v1381_v36, %v1380_v23  ;;  %v1065_v43 = vmul.f32 1.442695, %v1049_v20  ;;  %v2062_v61 = vadd.f32 %v2052_v47, %v1011_v18 }
 0x215   : > { %v1361_v6 = vadd.f32 %v1360_v2, %v1359_v54  ;;  %v1362_v9 = vpop.f32.mrf.mxu0  ;;  %v1526_v54 = vpop.eup %1525 }
 0x216   : > { %v1057_v63 = vsub.f32 0.0, %v2059_v4  ;;  %v1019_v19 = vmul.f32 %v1512_v48, %v1382_v41  ;;  %1527 = vpow2.f32 %v1065_v43  ;;  %v1050_v8 = vsub.f32 0.0, %v2062_v61 }
 0x217   : > { %v1012_v28 = vmul.f32 %v1514_v44, %v1361_v6  ;;  %v1383_v45 = vpop.f32.mrf.mxu1  ;;  %v1363_v60 = vpop.f32.mrf.mxu0  ;;  %1529 = vrcp.f32 %v757_v55 }
 0x218   : > { %v1081_v26 = vmul.f32 1.442695, %v1057_v63  ;;  %v2067_v59 = vadd.f32 %v2052_v47, %v1019_v19  ;;  %v1067_v12 = vmul.f32 1.442695, %v1050_v8  ;;  %v1364_v52 = vadd.f32 %v1363_v60, %v1362_v9 }
 0x219   : > { %v2070_v51 = vadd.f32 %v2052_v47, %v1012_v28  ;;  %v1384_v42 = vpop.f32.mrf.mxu1 }
 0x21a   : > { %1531 = vpow2.f32 %v1081_v26  ;;  %v1058_v53 = vsub.f32 0.0, %v2067_v59  ;;  %v1385_v38 = vadd.f32 %v1384_v42, %v1383_v45  ;;  %v1013_v33 = vmul.f32 %v1516_v37, %v1364_v52 }
 0x21b   : > { %1533 = vpow2.f32 %v1067_v12  ;;  %v1051_v30 = vsub.f32 0.0, %v2070_v51  ;;  %v1365_v31 = vpop.f32.mrf.mxu0  ;;  %v1386_v46 = vpop.f32.mrf.mxu1 }
 0x21c   : > { %1535 = vrcp.f32 %v778_v29  ;;  %v1083_v11 = vmul.f32 1.442695, %v1058_v53  ;;  %v1020_v25 = vmul.f32 %v1518_v39, %v1385_v38  ;;  %v2076_v0 = vadd.f32 %v2052_v47, %v1013_v33 }
 0x21d   : > { %1537 = vrcp.f32 %v2047_v58  ;;  %v1069_v32 = vmul.f32 1.442695, %v1051_v30  ;;  %v1366_v14 = vpop.f32.mrf.mxu0  ;;  %v1387_v55 = vpop.f32.mrf.mxu1 }
 0x21e   : > { %1539 = vpow2.f32 %v1083_v11  ;;  %v2079_v1 = vadd.f32 %v2052_v47, %v1020_v25  ;;  %v1367_v15 = vadd.f32 %v1366_v14, %v1365_v31  ;;  %v1388_v27 = vadd.f32 %v1387_v55, %v1386_v46 }
 0x21f   : > { %1541 = vpow2.f32 %v1069_v32  ;;  %v1052_v35 = vsub.f32 0.0, %v2076_v0  ;;  %v1368_v21 = vpop.f32.mrf.mxu0 }
 0x220   : > { %1543 = vrcp.f32 %v781_v24  ;;  %v1059_v58 = vsub.f32 0.0, %v2079_v1  ;;  %v1014_v13 = vmul.f32 %v1520_v5, %v1367_v15  ;;  %v1021_v22 = vmul.f32 %v1522_v7, %v1388_v27 }
 0x221   : > { %v1389_v40 = vpop.f32.mrf.mxu1  ;;  %1545 = vrcp.f32 %v784_v10  ;;  %v1071_v49 = vmul.f32 1.442695, %v1052_v35  ;;  %v1369_v16 = vpop.f32.mrf.mxu0 }
 0x222   : > { %v1085_v34 = vmul.f32 1.442695, %v1059_v58  ;;  %v2084_v3 = vadd.f32 %v2052_v47, %v1014_v13  ;;  %v2087_v23 = vadd.f32 %v2052_v47, %v1021_v22  ;;  %v1370_v56 = vadd.f32 %v1369_v16, %v1368_v21 }
 0x223   : > { %v1390_v17 = vpop.f32.mrf.mxu1  ;;  %1547 = vpow2.f32 %v1071_v49  ;;  %v1528_v20 = vpop.eup %1527 }
 0x224   : > { %v1391_v57 = vadd.f32 %v1390_v17, %v1389_v40  ;;  %1549 = vpow2.f32 %v1085_v34  ;;  %v1053_v18 = vsub.f32 0.0, %v2084_v3  ;;  %v1060_v36 = vsub.f32 0.0, %v2087_v23  ;;  %v1530_v44 = vpop.eup %1529 }
 0x225   : > { %v1015_v2 = vmul.f32 %v1524_v62, %v1370_v56  ;;  %v1371_v41 = vpop.f32.mrf.mxu0  ;;  %v1392_v48 = vpop.f32.mrf.mxu1  ;;  %v1097_v43 = vadd.f32 1.0, %v1528_v20 }
 0x226   : > { %v1022_v6 = vmul.f32 %v1526_v54, %v1391_v57  ;;  %v1073_v63 = vmul.f32 1.442695, %v1053_v18  ;;  %v1087_v19 = vmul.f32 1.442695, %v1060_v36 }
 0x227   : > { %v2092_v9 = vadd.f32 %v2052_v47, %v1015_v2  ;;  %v1372_v8 = vpop.f32.mrf.mxu0  ;;  %v1393_v28 = vpop.f32.mrf.mxu1  ;;  %1551 = vrcp.f32 %v1097_v43 }
 0x228   : > { %v1532_v45 = vpop.eup %1531  ;;  %v2095_v29 = vadd.f32 %v2052_v47, %v1022_v6  ;;  %v1373_v26 = vadd.f32 %v1372_v8, %v1371_v41  ;;  %v1394_v60 = vadd.f32 %v1393_v28, %v1392_v48  ;;  %1553 = vpow2.f32 %v1073_v63 }
 0x229   : > { %v1534_v12 = vpop.eup %1533  ;;  %v1105_v52 = vadd.f32 1.0, %v1532_v45  ;;  %v1054_v42 = vsub.f32 0.0, %v2092_v9  ;;  %v1374_v37 = vpop.f32.mrf.mxu0  ;;  %1555 = vpow2.f32 %v1087_v19  ;;  %v1145_v19 = vld [vmem:[%s2117_s29] sm:$0xff] }
 0x22a   : > { %v1395_v53 = vpop.f32.mrf.mxu1  ;;  %v1536_v38 = vpop.eup %1535  ;;  %v1098_v39 = vadd.f32 1.0, %v1534_v12  ;;  %v1061_v30 = vsub.f32 0.0, %v2095_v29  ;;  %v1016_v33 = vmul.f32 %v1530_v44, %v1373_v26 }
 0x22b   : > { %v1538_v31 = vpop.eup %1537  ;;  %1557 = vrcp.f32 %v1105_v52  ;;  %v1075_v46 = vmul.f32 1.442695, %v1054_v42  ;;  %v1023_v24 = vmul.f32 %v1536_v38, %v1394_v60  ;;  %v1375_v11 = vpop.f32.mrf.mxu0  ;;  %v1153_v42 = vld [vmem:[%s2117_s29 + $0x40] sm:$0xff] }
 0x22c   : > { %v1396_v25 = vpop.f32.mrf.mxu1  ;;  %v1540_v32 = vpop.eup %1539  ;;  %1559 = vrcp.f32 %v1098_v39  ;;  %v1089_v14 = vmul.f32 1.442695, %v1061_v30  ;;  %v2100_v55 = vadd.f32 %v2052_v47, %v1016_v33  ;;  %v1376_v5 = vadd.f32 %v1375_v11, %v1374_v37 }
 0x22d   : > { %v1542_v10 = vpop.eup %1541  ;;  %v1106_v15 = vadd.f32 1.0, %v1540_v32  ;;  %1561 = vpow2.f32 %v1075_v46  ;;  %v2103_v27 = vadd.f32 %v2052_v47, %v1023_v24  ;;  %v1397_v7 = vadd.f32 %v1396_v25, %v1395_v53  ;;  %v1154_v32 = vld [vmem:[%s2117_s29 + $0x48] sm:$0xff] }
 0x22e   : > { %v1398_v35 = vpop.f32.mrf.mxu1  ;;  %v1544_v21 = vpop.eup %1543  ;;  %v1099_v58 = vadd.f32 1.0, %v1542_v10  ;;  %1563 = vpow2.f32 %v1089_v14  ;;  %v1055_v13 = vsub.f32 0.0, %v2100_v55  ;;  %v1017_v22 = vmul.f32 %v1538_v31, %v1376_v5 }
 0x22f   : > { %v1546_v40 = vpop.eup %1545  ;;  %1565 = vrcp.f32 %v1106_v15  ;;  %v1062_v49 = vsub.f32 0.0, %v2103_v27  ;;  %v1024_v16 = vmul.f32 %v1544_v21, %v1397_v7 }
 0x230   : > { %v1399_v62 = vpop.f32.mrf.mxu1  ;;  %1567 = vrcp.f32 %v1099_v58  ;;  %v1077_v34 = vmul.f32 1.442695, %v1055_v13  ;;  %v2108_v56 = vadd.f32 %v2052_v47, %v1017_v22  ;;  %v1548_v54 = vpop.eup %1547  ;;  %v1148_v22 = vld [vmem:[%s2117_s29 + $0x18] sm:$0xff] }
 0x231   : > { %v1400_v17 = vadd.f32 %v1399_v62, %v1398_v35  ;;  %v1091_v57 = vmul.f32 1.442695, %v1062_v49  ;;  %v2111_v20 = vadd.f32 %v2052_v47, %v1024_v16  ;;  %v1550_v18 = vpop.eup %1549  ;;  %v1100_v36 = vadd.f32 1.0, %v1548_v54  ;;  %v1155_v16 = vld [vmem:[%s2117_s29 + $0x50] sm:$0xff] }
 0x232   : > { %1569 = vpow2.f32 %v1077_v34  ;;  %v1056_v2 = vsub.f32 0.0, %v2108_v56  ;;  %v1107_v48 = vadd.f32 1.0, %v1550_v18 }
 0x233   : > { %v1025_v41 = vmul.f32 %v1546_v40, %v1400_v17  ;;  %1571 = vpow2.f32 %v1091_v57  ;;  %v1063_v43 = vsub.f32 0.0, %v2111_v20 }
 0x234   : > { %1573 = vrcp.f32 %v1100_v36  ;;  %v1079_v6 = vmul.f32 1.442695, %v1056_v2  ;;  %v1552_v63 = vpop.eup %1551  ;;  %v1149_v2 = vld [vmem:[%s2117_s29 + $0x20] sm:$0xff] }
 0x235   : > { %v2122_v44 = vadd.f32 %v2052_v47, %v1025_v41  ;;  %1575 = vrcp.f32 %v1107_v48  ;;  %v1093_v8 = vmul.f32 1.442695, %v1063_v43  ;;  %v1554_v28 = vpop.eup %1553  ;;  %v1129_v45 = vmul.f32 %v1552_v63, %v2055_v50  ;;  %v1146_v50 = vld [vmem:[%s2117_s29 + $0x8] sm:$0xff]  ;;  %v1156_v48 = vld [vmem:[%s2117_s29 + $0x58] sm:$0xff] }
 0x236   : > { %1577 = vpow2.f32 %v1079_v6  ;;  %v1556_v60 = vpop.eup %1555  ;;  %v1101_v47 = vadd.f32 1.0, %v1554_v28  ;;  %v1150_v28 = vld [vmem:[%s2117_s29 + $0x28] sm:$0xff] }
 0x237   : > { %v1064_v26 = vsub.f32 0.0, %v2122_v44  ;;  %1579 = vpow2.f32 %v1093_v8  ;;  %v1161_v52 = vadd.f32 %v1145_v19, %v1129_v45  ;;  %v1108_v37 = vadd.f32 1.0, %v1556_v60  ;;  %v1157_v60 = vld [vmem:[%s2117_s29 + $0x60] sm:$0xff] }
 0x238   : > { %v1558_v12 = vpop.eup %1557  ;;  %1581 = vrcp.f32 %v1101_v47 }
 0x239   : > { %v1095_v53 = vmul.f32 1.442695, %v1064_v26  ;;  %v1560_v38 = vpop.eup %1559  ;;  %v1137_v39 = vmul.f32 %v1558_v12, %v2059_v4  ;;  %1177 = vst [vmem:[%s2131_s8] sm:$0xff] %v1161_v52  ;;  %1583 = vrcp.f32 %v1108_v37  ;;  %v1147_v4 = vld [vmem:[%s2117_s29 + $0x10] sm:$0xff] }
 0x23a   : > { %v1562_v30 = vpop.eup %1561  ;;  %v1130_v33 = vmul.f32 %v1560_v38, %v2062_v61  ;;  %v1151_v52 = vld [vmem:[%s2117_s29 + $0x30] sm:$0xff] }
 0x23b   : > { %v1564_v31 = vpop.eup %1563  ;;  %v1169_v46 = vadd.f32 %v1153_v42, %v1137_v39  ;;  %v1102_v24 = vadd.f32 1.0, %v1562_v30  ;;  %1585 = vpow2.f32 %v1095_v53  ;;  %v1152_v39 = vld [vmem:[%s2117_s29 + $0x38] sm:$0xff] }
 0x23c   : > { %v1566_v11 = vpop.eup %1565  ;;  %v1162_v25 = vadd.f32 %v1146_v50, %v1130_v33  ;;  %v1109_v14 = vadd.f32 1.0, %v1564_v31  ;;  %v1159_v31 = vld [vmem:[%s2117_s29 + $0x70] sm:$0xff] }
 0x23d   : > { %v1568_v5 = vpop.eup %1567  ;;  %1185 = vst [vmem:[%s2131_s8 + $0x40] sm:$0xff] %v1169_v46  ;;  %v1138_v10 = vmul.f32 %v1566_v11, %v2067_v59  ;;  %1587 = vrcp.f32 %v1102_v24 }
 0x23e   : > { %1178 = vst [vmem:[%s2131_s8 + $0x8] sm:$0xff] %v1162_v25  ;;  %v1131_v61 = vmul.f32 %v1568_v5, %v2070_v51  ;;  %1589 = vrcp.f32 %v1109_v14  ;;  %v1160_v25 = vld [vmem:[%s2117_s29 + $0x78] sm:$0xff] }
 0x23f   : > { %v1570_v15 = vpop.eup %1569  ;;  %v1170_v7 = vadd.f32 %v1154_v32, %v1138_v10 }
 0x240   : > { %v1572_v35 = vpop.eup %1571  ;;  %v1163_v21 = vadd.f32 %v1147_v4, %v1131_v61  ;;  %v1103_v58 = vadd.f32 1.0, %v1570_v15 }
 0x241   : > { %v1574_v13 = vpop.eup %1573  ;;  %1186 = vst [vmem:[%s2131_s8 + $0x48] sm:$0xff] %v1170_v7  ;;  %v1110_v40 = vadd.f32 1.0, %v1572_v35 }
 0x242   : > { %v1576_v49 = vpop.eup %1575  ;;  %1179 = vst [vmem:[%s2131_s8 + $0x10] sm:$0xff] %v1163_v21  ;;  %v1132_v59 = vmul.f32 %v1574_v13, %v2076_v0  ;;  %1591 = vrcp.f32 %v1103_v58 }
 0x243   : > { %v1578_v51 = vpop.eup %1577  ;;  %v1139_v62 = vmul.f32 %v1576_v49, %v2079_v1  ;;  %1593 = vrcp.f32 %v1110_v40 }
 0x244   : > { %v1580_v34 = vpop.eup %1579  ;;  %v1164_v17 = vadd.f32 %v1148_v22, %v1132_v59  ;;  %v1104_v54 = vadd.f32 1.0, %v1578_v51 }
 0x245   : > { %v1171_v57 = vadd.f32 %v1155_v16, %v1139_v62  ;;  %v1111_v18 = vadd.f32 1.0, %v1580_v34  ;;  %v1582_v36 = vpop.eup %1581 }
 0x246   : > { %1180 = vst [vmem:[%s2131_s8 + $0x18] sm:$0xff] %v1164_v17  ;;  %1595 = vrcp.f32 %v1104_v54  ;;  %v1584_v0 = vpop.eup %1583  ;;  %v1133_v41 = vmul.f32 %v1582_v36, %v2084_v3 }
 0x247   : > { %1187 = vst [vmem:[%s2131_s8 + $0x50] sm:$0xff] %v1171_v57  ;;  %1597 = vrcp.f32 %v1111_v18  ;;  %v1140_v43 = vmul.f32 %v1584_v0, %v2087_v23 }
 0x248   : > { %v1586_v1 = vpop.eup %1585  ;;  %v1165_v6 = vadd.f32 %v1149_v2, %v1133_v41 }
 0x249   : > { %v1112_v63 = vadd.f32 1.0, %v1586_v1  ;;  %v1172_v8 = vadd.f32 %v1156_v48, %v1140_v43 }
 0x24a   : > { %v1588_v19 = vpop.eup %1587  ;;  %1181 = vst [vmem:[%s2131_s8 + $0x20] sm:$0xff] %v1165_v6 }
 0x24b   : > { %v1590_v45 = vpop.eup %1589  ;;  %v1134_v26 = vmul.f32 %v1588_v19, %v2092_v9  ;;  %1599 = vrcp.f32 %v1112_v63  ;;  %1188 = vst [vmem:[%s2131_s8 + $0x58] sm:$0xff] %v1172_v8  ;;  %v1158_v9 = vld [vmem:[%s2117_s29 + $0x68] sm:$0xff] }
 0x24c   : > { %v1141_v3 = vmul.f32 %v1590_v45, %v2095_v29 }
 0x24d   : > { %v1166_v23 = vadd.f32 %v1150_v28, %v1134_v26 }
 0x24e   : > { %v1173_v47 = vadd.f32 %v1157_v60, %v1141_v3 }
 0x24f   : > { %v1592_v12 = vpop.eup %1591  ;;  %1182 = vst [vmem:[%s2131_s8 + $0x28] sm:$0xff] %v1166_v23 }
 0x250   : > { %v1594_v42 = vpop.eup %1593  ;;  %1189 = vst [vmem:[%s2131_s8 + $0x60] sm:$0xff] %v1173_v47  ;;  %v1135_v37 = vmul.f32 %v1592_v12, %v2100_v55 }
 0x251   : > { %v1142_v53 = vmul.f32 %v1594_v42, %v2103_v27 }
 0x252   : > { %v1167_v38 = vadd.f32 %v1151_v52, %v1135_v37 }
 0x253   : > { %v1596_v29 = vpop.eup %1595  ;;  %v1174_v50 = vadd.f32 %v1158_v9, %v1142_v53 }
 0x254   : > { %v1598_v30 = vpop.eup %1597  ;;  %1183 = vst [vmem:[%s2131_s8 + $0x30] sm:$0xff] %v1167_v38  ;;  %v1136_v33 = vmul.f32 %v1596_v29, %v2108_v56 }
 0x255   : > { %1190 = vst [vmem:[%s2131_s8 + $0x68] sm:$0xff] %v1174_v50  ;;  %v1143_v46 = vmul.f32 %v1598_v30, %v2111_v20 }
 0x256   : > { %v1168_v55 = vadd.f32 %v1152_v39, %v1136_v33 }
 0x257   : > { %v1175_v24 = vadd.f32 %v1159_v31, %v1143_v46 }
 0x258   : > { %v1600_v11 = vpop.eup %1599  ;;  %1184 = vst [vmem:[%s2131_s8 + $0x38] sm:$0xff] %v1168_v55 }
 0x259   : > { %1191 = vst [vmem:[%s2131_s8 + $0x70] sm:$0xff] %v1175_v24  ;;  %v1144_v27 = vmul.f32 %v1600_v11, %v2122_v44 }
 0x25b   : > { %v1176_v32 = vadd.f32 %v1160_v25, %v1144_v27 }
 0x25d   : > { %1192 = vst [vmem:[%s2131_s8 + $0x78] sm:$0xff] %v1176_v32 }
 0x25e PF: > { %s16_s21 = sadd.s32 1, %s1607_s21  }
 0x25f   : > { %p13_p4 = scmp.ge.s32.totalorder %s16_s21, 4  }
 0x261   :  { %15 = sbr.rel (!%p13_p4) target bundleno = 1 (0x1), region = 78 }

// kernel: gat_forward.9
= control target key start
LH: loop header
LB: loop body
LE: loop exit
PB: predicated region body
PF: predicated region fallthrough
CT: control target
= control target key end

     0   :  { %11 = vsyncpa [#allocation4], 0  ;;  %s602_s21 = smov 0   ;;  %s671_s0 = inlined_call_operand.vmem [shape: f32[256,128], index: 0, kind: input, shape index: {}]   ;;  %s672_s1 = inlined_call_operand.vmem [shape: f32[2,4,128], index: 1, kind: input, shape index: {}]   ;;  %s673_s2 = inlined_call_operand.vmem [shape: f32[4,1], index: 2, kind: input, shape index: {}]   ;;  %s674_s3 = inlined_call_operand.vmem [shape: f32[4,1], index: 3, kind: input, shape index: {}]   ;;  %s675_s4 = inlined_call_operand.vmem [shape: f32[1,128], index: 4, kind: input, shape index: {}]   ;;  %s676_s5 = inlined_call_operand.vmem [shape: f32[1,128], index: 5, kind: input, shape index: {}]   ;;  %s677_s6 = inlined_call_operand.hbm [shape: f32[4,128], index: 6, kind: output, shape index: {}]  }
   0x1 LB: > { %s608_s22 = sadd.s32 4294967295, %s561_s21   ;;  %p492_p0 = scmp.ge.s32.totalorder %s561_s21, 1  ;;  %s561_s21 = sphi %s602_s21, %s17_s21  }
   0x2   : > { %p218_p1 = scmp.lt.s32.totalorder %s561_s21, 3 }
   0x4   : > { %p219_p2 = pnand %p492_p0, %p218_p1 }
   0x5   : > { %s493_s23 = sshll.u32 (!%p219_p2), %s608_s22, 4  ;;  %p253_p3 = scmp.lt.s32.totalorder (!%p219_p2), %s608_s22, 1 }
   0x6   : > { %222 = sbr.rel (%p219_p2) target bundleno = 570 (0x23a), region = 44  ;;  %p248_p4 = scmp.lt.s32.totalorder (!%p219_p2), %s493_s23, 31 }
   0x7   : > { %p496_p5 = scmp.ne.s32.totalorder (!%p219_p2), %s608_s22, 0 }
   0xb   : > { %s254_s24 = scalar_select %p253_p3, %s608_s22, 1 }
   0xc   : > { %s679_s23 = smov (!%p248_p4, %s493_s23), 31  ;;  %260 = sbr.rel (%p496_p5) target bundleno = 19 (0x13), region = 48 }
   0xd   : > { %s495_s25 = sshll.u32 %s254_s24, 2  ;;  %s494_s26 = sshll.u32 %s679_s23, 3 }
   0xe   : > { %s618_s29 = scalar_lea.vmem %s672_s1, %s495_s25  ;;  %s623_s8 = scalar_lea.vmem %s671_s0, %s494_s26 }
  0x11   : > { %v563_v0 = vmov 0.0  }
  0x12   : > { %261 = vst [vmem:[#allocation2] sm:$0xff] %v563_v0 }
  0x13 PF: > { %v277_v1 = vld [vmem:[%s623_s8 + $0x78] sm:$0xff]  ;;  %v276_v2 = vld [vmem:[%s623_s8 + $0x70] sm:$0xff]  ;;  %v275_v3 = vld [vmem:[%s623_s8 + $0x68] sm:$0xff]  ;;  %v564_v6 = vmov 0.0   ;;  %p497_p6 = scmp.ne.s32.totalorder %s608_s22, 1 }
  0x14   : > { %v295_v4 = vmul.f32 %v277_v1, %v277_v1  ;;  %v294_v5 = vmul.f32 %v276_v2, %v276_v2  ;;  %360 = vmatprep.mubr.f32.mxu0 %v564_v6  ;;  %v274_v7 = vld [vmem:[%s623_s8 + $0x60] sm:$0xff]  ;;  %v293_v8 = vmul.f32 %v275_v3, %v275_v3  ;;  %v273_v9 = vld [vmem:[%s623_s8 + $0x58] sm:$0xff]  ;;  %v272_v11 = vld [vmem:[%s623_s8 + $0x50] sm:$0xff] }
  0x15   : > { %v292_v10 = vmul.f32 %v274_v7, %v274_v7  ;;  %v291_v12 = vmul.f32 %v273_v9, %v273_v9  ;;  %v271_v13 = vld [vmem:[%s623_s8 + $0x48] sm:$0xff]  ;;  %v290_v14 = vmul.f32 %v272_v11, %v272_v11  ;;  %v270_v15 = vld [vmem:[%s623_s8 + $0x40] sm:$0xff]  ;;  %v269_v17 = vld [vmem:[%s623_s8 + $0x38] sm:$0xff] }
  0x16   : > { %296 = vmatprep.subr.mxu0 %v295_v4  ;;  %v289_v16 = vmul.f32 %v271_v13, %v271_v13  ;;  %v288_v18 = vmul.f32 %v270_v15, %v270_v15  ;;  %v268_v19 = vld [vmem:[%s623_s8 + $0x30] sm:$0xff]  ;;  %v287_v20 = vmul.f32 %v269_v17, %v269_v17  ;;  %v267_v21 = vld [vmem:[%s623_s8 + $0x28] sm:$0xff]  ;;  %v266_v23 = vld [vmem:[%s623_s8 + $0x20] sm:$0xff] }
  0x17   : > { %297 = vmatpush1.msra.mxu0 %v277_v1  ;;  %v286_v22 = vmul.f32 %v268_v19, %v268_v19  ;;  %v285_v24 = vmul.f32 %v267_v21, %v267_v21  ;;  %v265_v25 = vld [vmem:[%s623_s8 + $0x18] sm:$0xff]  ;;  %v284_v26 = vmul.f32 %v266_v23, %v266_v23  ;;  %v264_v27 = vld [vmem:[%s623_s8 + $0x10] sm:$0xff]  ;;  %v263_v29 = vld [vmem:[%s623_s8 + $0x8] sm:$0xff] }
  0x18   : > { %298 = vmatprep.subr.mxu0 %v294_v5  ;;  %v283_v28 = vmul.f32 %v265_v25, %v265_v25  ;;  %v282_v30 = vmul.f32 %v264_v27, %v264_v27  ;;  %v262_v31 = vld [vmem:[%s623_s8] sm:$0xff]  ;;  %v281_v32 = vmul.f32 %v263_v29, %v263_v29 }
  0x19   : > { %299 = vmatpush1.msra.mxu0 %v276_v2  ;;  %v280_v33 = vmul.f32 %v262_v31, %v262_v31  ;;  %v278_v34 = vld [vmem:[%s618_s29] sm:$0xf] }
  0x1a   : > { %300 = vmatprep.subr.mxu0 %v293_v8  ;;  %v279_v36 = vld [vmem:[#allocation2] sm:$0xff] }
  0x1b   : > { %301 = vmatpush1.msra.mxu0 %v275_v3 }
  0x1c   : > { %302 = vmatprep.subr.mxu0 %v292_v10 }
  0x1d   : > { %303 = vmatpush1.msra.mxu0 %v274_v7 }
  0x1e   : > { %304 = vmatprep.subr.mxu0 %v291_v12 }
  0x1f   : > { %305 = vmatpush1.msra.mxu0 %v273_v9 }
  0x20   : > { %306 = vmatprep.subr.mxu0 %v290_v14 }
  0x21   : > { %307 = vmatpush1.msra.mxu0 %v272_v11 }
  0x22   : > { %308 = vmatprep.subr.mxu0 %v289_v16 }
  0x23   : > { %309 = vmatpush1.msra.mxu0 %v271_v13 }
  0x24   : > { %310 = vmatprep.subr.mxu0 %v288_v18 }
  0x25   : > { %311 = vmatpush1.msra.mxu0 %v270_v15 }
  0x26   : > { %312 = vmatprep.subr.mxu0 %v287_v20 }
  0x27   : > { %313 = vmatpush1.msra.mxu0 %v269_v17 }
  0x28   : > { %314 = vmatprep.subr.mxu0 %v286_v22 }
  0x29   : > { %315 = vmatpush1.msra.mxu0 %v268_v19 }
  0x2a   : > { %316 = vmatprep.subr.mxu0 %v285_v24 }
  0x2b   : > { %317 = vmatpush1.msra.mxu0 %v267_v21 }
  0x2c   : > { %318 = vmatprep.subr.mxu0 %v284_v26 }
  0x2d   : > { %319 = vmatpush1.msra.mxu0 %v266_v23 }
  0x2e   : > { %320 = vmatprep.subr.mxu0 %v283_v28 }
  0x2f   : > { %321 = vmatpush1.msra.mxu0 %v265_v25 }
  0x30   : > { %322 = vmatprep.subr.mxu0 %v282_v30 }
  0x31   : > { %323 = vmatpush1.msra.mxu0 %v264_v27 }
  0x32   : > { %324 = vmatprep.subr.mxu0 %v281_v32 }
  0x33   : > { %325 = vmatpush1.msra.mxu0 %v263_v29 }
  0x34   : > { %326 = vmatprep.subr.mxu0 %v280_v33 }
  0x35   : > { %327 = vmatpush1.msra.mxu0 %v262_v31 }
  0x36   : > { %361 = vmatmul.mubr.f32.vlgmr.msra.gmra.mxu0 %v278_v34 }
  0xf6   : > { %v362_v35 = vpop.f32.mrf.mxu0 }
  0xf8   : > { %v364_v37 = vpop.f32.mrf.mxu0 }
  0xf9   : > { %v369_v38 = vcombine.low %v362_v35, %v364_v37  ;;  %376 = sbr.rel (%p497_p6) target bundleno = 555 (0x22b), region = 52 }
  0xfb   : > { %v371_v39 = vadd.f32 %v369_v38, %v279_v36 }
  0xfd   : > { %372 = vst [vmem:[#allocation2] sm:$0xff] %v371_v39 }
  0xfe   : > { %vm379_vm0 = vcmask 1043456   ;;  %v395_v41 = vld [vmem:[%s673_s2] sm:$0xf]  ;;  %v565_v44 = vmov 0  }
  0xff   : > { %522 = vset.pattern.permute.xlu1 %v565_v44  ;;  %523 = vset.pattern.permute.xlu0 %v565_v44  ;;  %v378_v46 = vld [vmem:[%s674_s3] sm:$0xf] }
 0x100   : > { %398 = vperm.xlu1 %522, %v395_v41   ;;  %v498_v59 = vld [vmem:[%s675_s4] ss:$0 sm:$0xff] }
 0x101   : > { %v499_v62 = vld [vmem:[%s676_s5] ss:$0 sm:$0xff] }
 0x104   : > { %v377_v40 = vld [vmem:[#allocation2] sm:$0xff] }
 0x105   : > { %v380_v42 = vsel %vm379_vm0, %v377_v40, 0.0  ;;  %v385_v43 = vcombine.high %v377_v40, %v377_v40 }
 0x106   : > { %381 = vadd.xlane.f32.xlu0 %v380_v42 }
 0x107   : > { %v387_v45 = vsel %vm379_vm0, %v385_v43, 0.0 }
 0x10a   : > { %388 = vadd.xlane.f32.xlu0 %v387_v45 }
 0x17b   : > { %v399_v55 = vpop.permute.xlu1 %398 }
 0x17c   : > { %v401_v56 = vmul.f32 %v399_v55, %v377_v40 }
 0x18f   : > { %v382_v47 = vpop.xlane.xlu0 %381 }
 0x190   : > { %v383_v48 = vmul.f32 %v382_v47, %v378_v46 }
 0x192   : > { %405 = vperm.xlu1 %522, %v383_v48   ;;  %v391_v50 = vmul.f32 %v383_v48, %v383_v48 }
 0x193   : > { %v389_v49 = vpop.xlane.xlu0 %388 }
 0x194   : > { %v390_v51 = vmul.f32 %v389_v49, %v378_v46 }
 0x196   : > { %v392_v52 = vsub.f32 %v390_v51, %v391_v50 }
 0x198   : > { %v393_v53 = vadd.f32 1e-05, %v392_v52 }
 0x19a   : > { %525 = vrsqrt.f32 %v393_v53 }
 0x1a7   : > { %v526_v54 = vpop.eup %525 }
 0x1a8   : > { %411 = vperm.xlu0 %523, %v526_v54  }
 0x20d   : > { %v406_v57 = vpop.permute.xlu1 %405 }
 0x20e   : > { %v408_v58 = vsub.f32 %v401_v56, %v406_v57 }
 0x223   : > { %v412_v60 = vpop.permute.xlu0 %411 }
 0x224   : > { %v414_v61 = vmul.f32 %v412_v60, %v408_v58 }
 0x226   : > { %v421_v63 = vmul.f32 %v498_v59, %v414_v61 }
 0x228   : > { %v429_v0 = vadd.f32 %v499_v62, %v421_v63 }
 0x22a   : > { %430 = vst [vmem:[#allocation3] sm:$0xf] %v429_v0 }
 0x22b PF: > { %p508_p7 = scmp.eq.s32.totalorder %s608_s22, 1  ;;  %s566_s17 = smov [#allocation3]  }
 0x22c   : > { %s438_s18 = sshll.u32 %s566_s17, 4  ;;  %s439_s18 = int_to_ptr.vmem [resolvable:$true] %s438_s18 }
 0x22d   : > { %s527_s19 = scalar_lea.vmem %s439_s18, 64  ;;  %p534_p11 = scmp.lt.s32.totalorder %s439_s18, %s439_s18 }
 0x22e   : > { %p528_p8 = scmp.ne.s32.totalorder %s439_s18, %s527_s19  ;;  %p535_p12 = scmp.lt.s32.totalorder %s527_s19, %s527_s19 }
 0x230   : > { %p529_p9 = pnand %p528_p8, %p508_p7  ;;  %p536_p13 = por %p535_p12, %p534_p11 }
 0x232   : > { %p530_p10 = pneg %p529_p9 }
 0x234   : > { %p537_p0 = pnand %p536_p13, %p530_p10 }
 0x236   : > { %540 = shalt.err (!%p537_p0)
}
 0x237   : > { %505 = dma.vmem_to_hbm [thread:$0]  (%p508_p7), %s439_s18, 64, %s677_s6, [#allocation4]  }
 0x238   : > { %556 = dma.done.wait (%p508_p7), [#allocation4], 64  }
 0x239   : > { %558 = vsyncadd (%p508_p7), [#allocation4], 4294967232 }
 0x23a PF: > { %s17_s21 = sadd.s32 1, %s561_s21  }
 0x23b   : > { %p14_p1 = scmp.ge.s32.totalorder %s17_s21, 4  }
 0x23d   :  { %16 = sbr.rel (!%p14_p1) target bundleno = 1 (0x1), region = 82 }
 0x242   :  { %451 = vsyncpa [#allocation4], 1 }
 0x243   :  { %453 = vsyncpa [#allocation4 + $0x1], 1 }

</bundles_post_ra>
